<compile_context>
chip_gen: v7x
topology: tpu7x:2x2x1
jax: 0.10.0
libtpu: 0.0.40
codegen_flags: <defaults>
</compile_context>

<pallas_src>
import numpy as np
import jax
import jax.numpy as jnp
from jax.experimental import pallas as pl
from jax.experimental.pallas import tpu as pltpu


def _silu(x):
    return x * jax.nn.sigmoid(x)


def _build_fused_kernel(n_layer, B, T, D, V):
    BT = B * T
    scale = float(D) ** -0.5   # default q scale = head_k_dim ** -0.5

    def kernel(tok_ref, mstrict_ref, mincl_ref, emb_ref, *rest):
        layer_refs = rest[:3 * n_layer]
        lnw_ref, lnb_ref, wh_ref, out_ref = rest[3 * n_layer:]

        m_strict = mstrict_ref[...]            # (BT, BT) block-diag strictly-lower mask
        m_incl = mincl_ref[...]                # (BT, BT) block-diag inclusive-lower mask

        # ---- embedding lookup as one-hot matmul (fully in-kernel) ----
        tok = tok_ref[...]                                            # (BT, 1) int32
        vocab_iota = jax.lax.broadcasted_iota(jnp.int32, (BT, V), 1)
        onehot = (vocab_iota == tok).astype(jnp.float32)              # (BT, V)
        x = jnp.dot(onehot, emb_ref[...].astype(jnp.float32),
                    preferred_element_type=jnp.float32)               # (BT, D)

        # ---- DeltaNet layers (chunked / WY delta rule, one chunk per batch element) ----
        for l in range(n_layer):
            wqkvb = layer_refs[3 * l][...]      # (D, 3D+1): [Wq | Wk | Wv | Wbeta]
            onw = layer_refs[3 * l + 1][...]    # (1, D)  RMSNorm weight
            wo = layer_refs[3 * l + 2][...]     # (D, D)

            proj = jnp.dot(x, wqkvb, preferred_element_type=jnp.float32)  # (BT, 3D+1)
            q = _silu(proj[:, 0:D])
            k = _silu(proj[:, D:2 * D])
            v = _silu(proj[:, 2 * D:3 * D])
            beta = jax.nn.sigmoid(proj[:, 3 * D:3 * D + 1])               # (BT, 1)

            # qk_norm='l2' over head dim, then default q scale
            q = q * jax.lax.rsqrt(jnp.sum(q * q, axis=-1, keepdims=True) + 1e-6)
            k = k * jax.lax.rsqrt(jnp.sum(k * k, axis=-1, keepdims=True) + 1e-6)
            q = q * scale

            # A[i,j] = beta_i * (k_i . k_j) for j < i within the same batch element
            kk = jax.lax.dot_general(k, k, (((1,), (1,)), ((), ())),
                                     preferred_element_type=jnp.float32)  # (BT, BT)
            A = (beta * kk) * m_strict

            # u = (I + A)^-1 (beta * v); A is nilpotent (strictly lower per block),
            # so u <- b - A u converges exactly after T-1 iterations.
            bvec = beta * v                                               # (BT, D)
            u = bvec
            for _ in range(T - 1):
                u = bvec - jnp.dot(A, u, preferred_element_type=jnp.float32)

            # o_t = q_t S_t = sum_{s<=t} (q_t . k_s) u_s   (block-diag inclusive tril)
            qk = jax.lax.dot_general(q, k, (((1,), (1,)), ((), ())),
                                     preferred_element_type=jnp.float32) * m_incl
            o = jnp.dot(qk, u, preferred_element_type=jnp.float32)        # (BT, D)

            # per-head RMSNorm (eps=1e-5, weight init 1), then output projection
            o = o * jax.lax.rsqrt(jnp.mean(o * o, axis=-1, keepdims=True) + 1e-5)
            o = o * onw
            x = jnp.dot(o, wo, preferred_element_type=jnp.float32)

        # ---- final LayerNorm + lm_head ----
        mu = jnp.mean(x, axis=-1, keepdims=True)
        xc = x - mu
        var = jnp.mean(xc * xc, axis=-1, keepdims=True)
        xh = xc * jax.lax.rsqrt(var + 1e-5)
        xh = xh * lnw_ref[...] + lnb_ref[...]
        out_ref[...] = jnp.dot(xh, wh_ref[...],
                               preferred_element_type=jnp.float32).astype(out_ref.dtype)

    return kernel


def deltanet_model_forward(tokens, params):
    B, T = tokens.shape
    V, D = params["emb"].shape
    n_layer = len(params["layers"])
    BT = B * T

    tok = tokens.reshape(BT, 1).astype(jnp.int32)

    # Block-diagonal causal masks so batch elements stay independent in the
    # flattened (B*T) slab (state starts at zero for each batch element).
    r = np.arange(BT)
    same = (r[:, None] // T) == (r[None, :] // T)
    m_strict = jnp.asarray((same & (r[None, :] < r[:, None])).astype(np.float32))
    m_incl = jnp.asarray((same & (r[None, :] <= r[:, None])).astype(np.float32))

    args = [tok, m_strict, m_incl, params["emb"]]
    for lyr in params["layers"]:
        wqkvb = jnp.concatenate([lyr["wq"], lyr["wk"], lyr["wv"], lyr["wb"]], axis=1)
        args += [wqkvb, lyr["onw"], lyr["wo"]]
    args += [params["ln_w"], params["ln_b"], params["w_head"]]

    kernel = _build_fused_kernel(n_layer, B, T, D, V)
    logits = pl.pallas_call(
        kernel,
        out_shape=jax.ShapeDtypeStruct((BT, V), jnp.float32),
        # whole-array, VMEM-resident blocks (no grid -> weights DMA'd once)
        in_specs=[pl.BlockSpec(memory_space=pltpu.MemorySpace.VMEM)] * len(args),
        out_specs=pl.BlockSpec(memory_space=pltpu.MemorySpace.VMEM),
    )(*args)
    return logits.reshape(B, T, V)


def init_params(key, vocab_size=16, d_model=16, n_layer=2):
    def linear(k, fan_in, shape):
        bound = fan_in ** -0.5
        return jax.random.uniform(k, shape, jnp.float32, -bound, bound)

    keys = jax.random.split(key, 2 + n_layer)
    emb = jax.random.normal(keys[0], (vocab_size, d_model), jnp.float32)
    layers = []
    for i in range(n_layer):
        kq, kk, kv, kb, ko = jax.random.split(keys[1 + i], 5)
        layers.append(dict(
            wq=linear(kq, d_model, (d_model, d_model)),
            wk=linear(kk, d_model, (d_model, d_model)),
            wv=linear(kv, d_model, (d_model, d_model)),
            wb=linear(kb, d_model, (d_model, 1)),        # beta projection (num_heads=1)
            onw=jnp.ones((1, d_model), jnp.float32),     # RMSNorm weight
            wo=linear(ko, d_model, (d_model, d_model)),
        ))
    return dict(
        emb=emb,
        layers=layers,
        ln_w=jnp.ones((1, d_model), jnp.float32),
        ln_b=jnp.zeros((1, d_model), jnp.float32),
        w_head=linear(keys[-1], d_model, (d_model, vocab_size)),
    )


if __name__ == "__main__":
    vocab_size, d_model, n_layer = 16, 16, 2
    B, T = 2, 8

    key = jax.random.PRNGKey(0)
    pkey, tkey = jax.random.split(key)
    params = init_params(pkey, vocab_size, d_model, n_layer)
    tokens = jax.random.randint(tkey, (B, T), 0, vocab_size, dtype=jnp.int32)

    logits = deltanet_model_forward(tokens, params)
    jax.block_until_ready(logits)
    assert logits.shape == (B, T, vocab_size)
    print("KERNEL_OK")
</pallas_src>

<mosaic_0001>
module attributes {stable_mosaic.version = 11 : i64} {
  func.func @kernel(%arg0: memref<16x1xi32, #tpu.memory_space<vmem>>, %arg1: memref<16x16xf32, #tpu.memory_space<vmem>>, %arg2: memref<16x16xf32, #tpu.memory_space<vmem>>, %arg3: memref<16x16xf32, #tpu.memory_space<vmem>>, %arg4: memref<16x49xf32, #tpu.memory_space<vmem>>, %arg5: memref<1x16xf32, #tpu.memory_space<vmem>>, %arg6: memref<16x16xf32, #tpu.memory_space<vmem>>, %arg7: memref<16x49xf32, #tpu.memory_space<vmem>>, %arg8: memref<1x16xf32, #tpu.memory_space<vmem>>, %arg9: memref<16x16xf32, #tpu.memory_space<vmem>>, %arg10: memref<1x16xf32, #tpu.memory_space<vmem>>, %arg11: memref<1x16xf32, #tpu.memory_space<vmem>>, %arg12: memref<16x16xf32, #tpu.memory_space<vmem>>, %arg13: memref<16x16xf32, #tpu.memory_space<vmem>>) attributes {dimension_semantics = [], scalar_prefetch = 0 : i64, scratch_operands = 0 : i64, tpu.core_type = #tpu.core_type<tc>} {
    %c0 = arith.constant 0 : index
    %c0_0 = arith.constant 0 : index
    %0 = vector.load %arg1[%c0, %c0_0] : memref<16x16xf32, #tpu.memory_space<vmem>>, vector<16x16xf32>
    %c0_1 = arith.constant 0 : index
    %c0_2 = arith.constant 0 : index
    %1 = vector.load %arg2[%c0_1, %c0_2] : memref<16x16xf32, #tpu.memory_space<vmem>>, vector<16x16xf32>
    %c0_3 = arith.constant 0 : index
    %c0_4 = arith.constant 0 : index
    %2 = vector.load %arg0[%c0_3, %c0_4] : memref<16x1xi32, #tpu.memory_space<vmem>>, vector<16x1xi32>
    %3 = tpu.iota {dimensions = array<i32: 1>} : vector<16x16xi32>
    %4 = vector.broadcast %2 : vector<16x1xi32> to vector<16x16xi32>
    %5 = arith.cmpi eq, %3, %4 : vector<16x16xi32>
    %6 = arith.extui %5 : vector<16x16xi1> to vector<16x16xi32>
    %7 = arith.sitofp %6 : vector<16x16xi32> to vector<16x16xf32>
    %c0_5 = arith.constant 0 : index
    %c0_6 = arith.constant 0 : index
    %8 = vector.load %arg3[%c0_5, %c0_6] : memref<16x16xf32, #tpu.memory_space<vmem>>, vector<16x16xf32>
    %cst = arith.constant dense<0.000000e+00> : vector<16x16xf32>
    %9 = tpu.matmul %7, %8, %cst {dimension_numbers = #tpu.dot_dimension_numbers<[1], [0], [0], [1], [0, 0, 1, 1], [], []>} : vector<16x16xf32>, vector<16x16xf32>, vector<16x16xf32> -> vector<16x16xf32>
    %c0_7 = arith.constant 0 : index
    %c0_8 = arith.constant 0 : index
    %10 = vector.load %arg4[%c0_7, %c0_8] : memref<16x49xf32, #tpu.memory_space<vmem>>, vector<16x49xf32>
    %c0_9 = arith.constant 0 : index
    %c0_10 = arith.constant 0 : index
    %11 = vector.load %arg5[%c0_9, %c0_10] : memref<1x16xf32, #tpu.memory_space<vmem>>, vector<1x16xf32>
    %c0_11 = arith.constant 0 : index
    %c0_12 = arith.constant 0 : index
    %12 = vector.load %arg6[%c0_11, %c0_12] : memref<16x16xf32, #tpu.memory_space<vmem>>, vector<16x16xf32>
    %cst_13 = arith.constant dense<0.000000e+00> : vector<16x49xf32>
    %13 = tpu.matmul %9, %10, %cst_13 {dimension_numbers = #tpu.dot_dimension_numbers<[1], [0], [0], [1], [0, 0, 1, 1], [], []>} : vector<16x16xf32>, vector<16x49xf32>, vector<16x49xf32> -> vector<16x49xf32>
    %14 = vector.extract_strided_slice %13 {offsets = [0, 0], sizes = [16, 16], strides = [1, 1]} : vector<16x49xf32> to vector<16x16xf32>
    %15 = arith.negf %14 : vector<16x16xf32>
    %16 = math.exp %15 : vector<16x16xf32>
    %cst_14 = arith.constant 1.000000e+00 : f32
    %17 = vector.broadcast %cst_14 : f32 to vector<16x16xf32>
    %18 = arith.addf %17, %16 : vector<16x16xf32>
    %19 = arith.divf %17, %18 : vector<16x16xf32>
    %20 = arith.mulf %14, %19 : vector<16x16xf32>
    %21 = vector.extract_strided_slice %13 {offsets = [0, 16], sizes = [16, 16], strides = [1, 1]} : vector<16x49xf32> to vector<16x16xf32>
    %22 = arith.negf %21 : vector<16x16xf32>
    %23 = math.exp %22 : vector<16x16xf32>
    %cst_15 = arith.constant 1.000000e+00 : f32
    %24 = vector.broadcast %cst_15 : f32 to vector<16x16xf32>
    %25 = arith.addf %24, %23 : vector<16x16xf32>
    %26 = arith.divf %24, %25 : vector<16x16xf32>
    %27 = arith.mulf %21, %26 : vector<16x16xf32>
    %28 = vector.extract_strided_slice %13 {offsets = [0, 32], sizes = [16, 16], strides = [1, 1]} : vector<16x49xf32> to vector<16x16xf32>
    %29 = arith.negf %28 : vector<16x16xf32>
    %30 = math.exp %29 : vector<16x16xf32>
    %cst_16 = arith.constant 1.000000e+00 : f32
    %31 = vector.broadcast %cst_16 : f32 to vector<16x16xf32>
    %32 = arith.addf %31, %30 : vector<16x16xf32>
    %33 = arith.divf %31, %32 : vector<16x16xf32>
    %34 = arith.mulf %28, %33 : vector<16x16xf32>
    %35 = vector.extract_strided_slice %13 {offsets = [0, 48], sizes = [16, 1], strides = [1, 1]} : vector<16x49xf32> to vector<16x1xf32>
    %36 = arith.negf %35 : vector<16x1xf32>
    %37 = math.exp %36 : vector<16x1xf32>
    %cst_17 = arith.constant 1.000000e+00 : f32
    %38 = vector.broadcast %cst_17 : f32 to vector<16x1xf32>
    %39 = arith.addf %38, %37 : vector<16x1xf32>
    %40 = arith.divf %38, %39 : vector<16x1xf32>
    %41 = arith.mulf %20, %20 : vector<16x16xf32>
    %cst_18 = arith.constant dense<0.000000e+00> : vector<16xf32>
    %42 = vector.multi_reduction <add>, %41, %cst_18 [1] : vector<16x16xf32> to vector<16xf32>
    %43 = vector.shape_cast %42 : vector<16xf32> to vector<16x1xf32>
    %cst_19 = arith.constant 9.99999997E-7 : f32
    %44 = vector.broadcast %cst_19 : f32 to vector<16x1xf32>
    %45 = arith.addf %43, %44 : vector<16x1xf32>
    %46 = math.rsqrt %45 : vector<16x1xf32>
    %47 = vector.broadcast %46 : vector<16x1xf32> to vector<16x16xf32>
    %48 = arith.mulf %20, %47 : vector<16x16xf32>
    %49 = arith.mulf %27, %27 : vector<16x16xf32>
    %cst_20 = arith.constant dense<0.000000e+00> : vector<16xf32>
    %50 = vector.multi_reduction <add>, %49, %cst_20 [1] : vector<16x16xf32> to vector<16xf32>
    %51 = vector.shape_cast %50 : vector<16xf32> to vector<16x1xf32>
    %cst_21 = arith.constant 9.99999997E-7 : f32
    %52 = vector.broadcast %cst_21 : f32 to vector<16x1xf32>
    %53 = arith.addf %51, %52 : vector<16x1xf32>
    %54 = math.rsqrt %53 : vector<16x1xf32>
    %55 = vector.broadcast %54 : vector<16x1xf32> to vector<16x16xf32>
    %56 = arith.mulf %27, %55 : vector<16x16xf32>
    %cst_22 = arith.constant 2.500000e-01 : f32
    %57 = vector.broadcast %cst_22 : f32 to vector<16x16xf32>
    %58 = arith.mulf %48, %57 : vector<16x16xf32>
    %cst_23 = arith.constant dense<0.000000e+00> : vector<16x16xf32>
    %59 = tpu.matmul %56, %56, %cst_23 {dimension_numbers = #tpu.dot_dimension_numbers<[1], [1], [0], [0], [0, 0, 1, 0], [], []>} : vector<16x16xf32>, vector<16x16xf32>, vector<16x16xf32> -> vector<16x16xf32>
    %60 = vector.broadcast %40 : vector<16x1xf32> to vector<16x16xf32>
    %61 = arith.mulf %60, %59 : vector<16x16xf32>
    %62 = arith.mulf %61, %0 : vector<16x16xf32>
    %63 = vector.broadcast %40 : vector<16x1xf32> to vector<16x16xf32>
    %64 = arith.mulf %63, %34 : vector<16x16xf32>
    %cst_24 = arith.constant dense<0.000000e+00> : vector<16x16xf32>
    %65 = tpu.matmul %62, %64, %cst_24 {dimension_numbers = #tpu.dot_dimension_numbers<[1], [0], [0], [1], [0, 0, 1, 1], [], []>} : vector<16x16xf32>, vector<16x16xf32>, vector<16x16xf32> -> vector<16x16xf32>
    %66 = arith.subf %64, %65 : vector<16x16xf32>
    %cst_25 = arith.constant dense<0.000000e+00> : vector<16x16xf32>
    %67 = tpu.matmul %62, %66, %cst_25 {dimension_numbers = #tpu.dot_dimension_numbers<[1], [0], [0], [1], [0, 0, 1, 1], [], []>} : vector<16x16xf32>, vector<16x16xf32>, vector<16x16xf32> -> vector<16x16xf32>
    %68 = arith.subf %64, %67 : vector<16x16xf32>
    %cst_26 = arith.constant dense<0.000000e+00> : vector<16x16xf32>
    %69 = tpu.matmul %62, %68, %cst_26 {dimension_numbers = #tpu.dot_dimension_numbers<[1], [0], [0], [1], [0, 0, 1, 1], [], []>} : vector<16x16xf32>, vector<16x16xf32>, vector<16x16xf32> -> vector<16x16xf32>
    %70 = arith.subf %64, %69 : vector<16x16xf32>
    %cst_27 = arith.constant dense<0.000000e+00> : vector<16x16xf32>
    %71 = tpu.matmul %62, %70, %cst_27 {dimension_numbers = #tpu.dot_dimension_numbers<[1], [0], [0], [1], [0, 0, 1, 1], [], []>} : vector<16x16xf32>, vector<16x16xf32>, vector<16x16xf32> -> vector<16x16xf32>
    %72 = arith.subf %64, %71 : vector<16x16xf32>
    %cst_28 = arith.constant dense<0.000000e+00> : vector<16x16xf32>
    %73 = tpu.matmul %62, %72, %cst_28 {dimension_numbers = #tpu.dot_dimension_numbers<[1], [0], [0], [1], [0, 0, 1, 1], [], []>} : vector<16x16xf32>, vector<16x16xf32>, vector<16x16xf32> -> vector<16x16xf32>
    %74 = arith.subf %64, %73 : vector<16x16xf32>
    %cst_29 = arith.constant dense<0.000000e+00> : vector<16x16xf32>
    %75 = tpu.matmul %62, %74, %cst_29 {dimension_numbers = #tpu.dot_dimension_numbers<[1], [0], [0], [1], [0, 0, 1, 1], [], []>} : vector<16x16xf32>, vector<16x16xf32>, vector<16x16xf32> -> vector<16x16xf32>
    %76 = arith.subf %64, %75 : vector<16x16xf32>
    %cst_30 = arith.constant dense<0.000000e+00> : vector<16x16xf32>
    %77 = tpu.matmul %62, %76, %cst_30 {dimension_numbers = #tpu.dot_dimension_numbers<[1], [0], [0], [1], [0, 0, 1, 1], [], []>} : vector<16x16xf32>, vector<16x16xf32>, vector<16x16xf32> -> vector<16x16xf32>
    %78 = arith.subf %64, %77 : vector<16x16xf32>
    %cst_31 = arith.constant dense<0.000000e+00> : vector<16x16xf32>
    %79 = tpu.matmul %58, %56, %cst_31 {dimension_numbers = #tpu.dot_dimension_numbers<[1], [1], [0], [0], [0, 0, 1, 0], [], []>} : vector<16x16xf32>, vector<16x16xf32>, vector<16x16xf32> -> vector<16x16xf32>
    %80 = arith.mulf %79, %1 : vector<16x16xf32>
    %cst_32 = arith.constant dense<0.000000e+00> : vector<16x16xf32>
    %81 = tpu.matmul %80, %78, %cst_32 {dimension_numbers = #tpu.dot_dimension_numbers<[1], [0], [0], [1], [0, 0, 1, 1], [], []>} : vector<16x16xf32>, vector<16x16xf32>, vector<16x16xf32> -> vector<16x16xf32>
    %82 = arith.mulf %81, %81 : vector<16x16xf32>
    %cst_33 = arith.constant dense<0.000000e+00> : vector<16xf32>
    %83 = vector.multi_reduction <add>, %82, %cst_33 [1] : vector<16x16xf32> to vector<16xf32>
    %84 = vector.shape_cast %83 : vector<16xf32> to vector<16x1xf32>
    %cst_34 = arith.constant 1.600000e+01 : f32
    %85 = vector.broadcast %cst_34 : f32 to vector<16x1xf32>
    %86 = arith.divf %84, %85 : vector<16x1xf32>
    %cst_35 = arith.constant 9.99999974E-6 : f32
    %87 = vector.broadcast %cst_35 : f32 to vector<16x1xf32>
    %88 = arith.addf %86, %87 : vector<16x1xf32>
    %89 = math.rsqrt %88 : vector<16x1xf32>
    %90 = vector.broadcast %89 : vector<16x1xf32> to vector<16x16xf32>
    %91 = arith.mulf %81, %90 : vector<16x16xf32>
    %92 = vector.broadcast %11 : vector<1x16xf32> to vector<16x16xf32>
    %93 = arith.mulf %91, %92 : vector<16x16xf32>
    %cst_36 = arith.constant dense<0.000000e+00> : vector<16x16xf32>
    %94 = tpu.matmul %93, %12, %cst_36 {dimension_numbers = #tpu.dot_dimension_numbers<[1], [0], [0], [1], [0, 0, 1, 1], [], []>} : vector<16x16xf32>, vector<16x16xf32>, vector<16x16xf32> -> vector<16x16xf32>
    %c0_37 = arith.constant 0 : index
    %c0_38 = arith.constant 0 : index
    %95 = vector.load %arg7[%c0_37, %c0_38] : memref<16x49xf32, #tpu.memory_space<vmem>>, vector<16x49xf32>
    %c0_39 = arith.constant 0 : index
    %c0_40 = arith.constant 0 : index
    %96 = vector.load %arg8[%c0_39, %c0_40] : memref<1x16xf32, #tpu.memory_space<vmem>>, vector<1x16xf32>
    %c0_41 = arith.constant 0 : index
    %c0_42 = arith.constant 0 : index
    %97 = vector.load %arg9[%c0_41, %c0_42] : memref<16x16xf32, #tpu.memory_space<vmem>>, vector<16x16xf32>
    %cst_43 = arith.constant dense<0.000000e+00> : vector<16x49xf32>
    %98 = tpu.matmul %94, %95, %cst_43 {dimension_numbers = #tpu.dot_dimension_numbers<[1], [0], [0], [1], [0, 0, 1, 1], [], []>} : vector<16x16xf32>, vector<16x49xf32>, vector<16x49xf32> -> vector<16x49xf32>
    %99 = vector.extract_strided_slice %98 {offsets = [0, 0], sizes = [16, 16], strides = [1, 1]} : vector<16x49xf32> to vector<16x16xf32>
    %100 = arith.negf %99 : vector<16x16xf32>
    %101 = math.exp %100 : vector<16x16xf32>
    %cst_44 = arith.constant 1.000000e+00 : f32
    %102 = vector.broadcast %cst_44 : f32 to vector<16x16xf32>
    %103 = arith.addf %102, %101 : vector<16x16xf32>
    %104 = arith.divf %102, %103 : vector<16x16xf32>
    %105 = arith.mulf %99, %104 : vector<16x16xf32>
    %106 = vector.extract_strided_slice %98 {offsets = [0, 16], sizes = [16, 16], strides = [1, 1]} : vector<16x49xf32> to vector<16x16xf32>
    %107 = arith.negf %106 : vector<16x16xf32>
    %108 = math.exp %107 : vector<16x16xf32>
    %cst_45 = arith.constant 1.000000e+00 : f32
    %109 = vector.broadcast %cst_45 : f32 to vector<16x16xf32>
    %110 = arith.addf %109, %108 : vector<16x16xf32>
    %111 = arith.divf %109, %110 : vector<16x16xf32>
    %112 = arith.mulf %106, %111 : vector<16x16xf32>
    %113 = vector.extract_strided_slice %98 {offsets = [0, 32], sizes = [16, 16], strides = [1, 1]} : vector<16x49xf32> to vector<16x16xf32>
    %114 = arith.negf %113 : vector<16x16xf32>
    %115 = math.exp %114 : vector<16x16xf32>
    %cst_46 = arith.constant 1.000000e+00 : f32
    %116 = vector.broadcast %cst_46 : f32 to vector<16x16xf32>
    %117 = arith.addf %116, %115 : vector<16x16xf32>
    %118 = arith.divf %116, %117 : vector<16x16xf32>
    %119 = arith.mulf %113, %118 : vector<16x16xf32>
    %120 = vector.extract_strided_slice %98 {offsets = [0, 48], sizes = [16, 1], strides = [1, 1]} : vector<16x49xf32> to vector<16x1xf32>
    %121 = arith.negf %120 : vector<16x1xf32>
    %122 = math.exp %121 : vector<16x1xf32>
    %cst_47 = arith.constant 1.000000e+00 : f32
    %123 = vector.broadcast %cst_47 : f32 to vector<16x1xf32>
    %124 = arith.addf %123, %122 : vector<16x1xf32>
    %125 = arith.divf %123, %124 : vector<16x1xf32>
    %126 = arith.mulf %105, %105 : vector<16x16xf32>
    %cst_48 = arith.constant dense<0.000000e+00> : vector<16xf32>
    %127 = vector.multi_reduction <add>, %126, %cst_48 [1] : vector<16x16xf32> to vector<16xf32>
    %128 = vector.shape_cast %127 : vector<16xf32> to vector<16x1xf32>
    %cst_49 = arith.constant 9.99999997E-7 : f32
    %129 = vector.broadcast %cst_49 : f32 to vector<16x1xf32>
    %130 = arith.addf %128, %129 : vector<16x1xf32>
    %131 = math.rsqrt %130 : vector<16x1xf32>
    %132 = vector.broadcast %131 : vector<16x1xf32> to vector<16x16xf32>
    %133 = arith.mulf %105, %132 : vector<16x16xf32>
    %134 = arith.mulf %112, %112 : vector<16x16xf32>
    %cst_50 = arith.constant dense<0.000000e+00> : vector<16xf32>
    %135 = vector.multi_reduction <add>, %134, %cst_50 [1] : vector<16x16xf32> to vector<16xf32>
    %136 = vector.shape_cast %135 : vector<16xf32> to vector<16x1xf32>
    %cst_51 = arith.constant 9.99999997E-7 : f32
    %137 = vector.broadcast %cst_51 : f32 to vector<16x1xf32>
    %138 = arith.addf %136, %137 : vector<16x1xf32>
    %139 = math.rsqrt %138 : vector<16x1xf32>
    %140 = vector.broadcast %139 : vector<16x1xf32> to vector<16x16xf32>
    %141 = arith.mulf %112, %140 : vector<16x16xf32>
    %cst_52 = arith.constant 2.500000e-01 : f32
    %142 = vector.broadcast %cst_52 : f32 to vector<16x16xf32>
    %143 = arith.mulf %133, %142 : vector<16x16xf32>
    %cst_53 = arith.constant dense<0.000000e+00> : vector<16x16xf32>
    %144 = tpu.matmul %141, %141, %cst_53 {dimension_numbers = #tpu.dot_dimension_numbers<[1], [1], [0], [0], [0, 0, 1, 0], [], []>} : vector<16x16xf32>, vector<16x16xf32>, vector<16x16xf32> -> vector<16x16xf32>
    %145 = vector.broadcast %125 : vector<16x1xf32> to vector<16x16xf32>
    %146 = arith.mulf %145, %144 : vector<16x16xf32>
    %147 = arith.mulf %146, %0 : vector<16x16xf32>
    %148 = vector.broadcast %125 : vector<16x1xf32> to vector<16x16xf32>
    %149 = arith.mulf %148, %119 : vector<16x16xf32>
    %cst_54 = arith.constant dense<0.000000e+00> : vector<16x16xf32>
    %150 = tpu.matmul %147, %149, %cst_54 {dimension_numbers = #tpu.dot_dimension_numbers<[1], [0], [0], [1], [0, 0, 1, 1], [], []>} : vector<16x16xf32>, vector<16x16xf32>, vector<16x16xf32> -> vector<16x16xf32>
    %151 = arith.subf %149, %150 : vector<16x16xf32>
    %cst_55 = arith.constant dense<0.000000e+00> : vector<16x16xf32>
    %152 = tpu.matmul %147, %151, %cst_55 {dimension_numbers = #tpu.dot_dimension_numbers<[1], [0], [0], [1], [0, 0, 1, 1], [], []>} : vector<16x16xf32>, vector<16x16xf32>, vector<16x16xf32> -> vector<16x16xf32>
    %153 = arith.subf %149, %152 : vector<16x16xf32>
    %cst_56 = arith.constant dense<0.000000e+00> : vector<16x16xf32>
    %154 = tpu.matmul %147, %153, %cst_56 {dimension_numbers = #tpu.dot_dimension_numbers<[1], [0], [0], [1], [0, 0, 1, 1], [], []>} : vector<16x16xf32>, vector<16x16xf32>, vector<16x16xf32> -> vector<16x16xf32>
    %155 = arith.subf %149, %154 : vector<16x16xf32>
    %cst_57 = arith.constant dense<0.000000e+00> : vector<16x16xf32>
    %156 = tpu.matmul %147, %155, %cst_57 {dimension_numbers = #tpu.dot_dimension_numbers<[1], [0], [0], [1], [0, 0, 1, 1], [], []>} : vector<16x16xf32>, vector<16x16xf32>, vector<16x16xf32> -> vector<16x16xf32>
    %157 = arith.subf %149, %156 : vector<16x16xf32>
    %cst_58 = arith.constant dense<0.000000e+00> : vector<16x16xf32>
    %158 = tpu.matmul %147, %157, %cst_58 {dimension_numbers = #tpu.dot_dimension_numbers<[1], [0], [0], [1], [0, 0, 1, 1], [], []>} : vector<16x16xf32>, vector<16x16xf32>, vector<16x16xf32> -> vector<16x16xf32>
    %159 = arith.subf %149, %158 : vector<16x16xf32>
    %cst_59 = arith.constant dense<0.000000e+00> : vector<16x16xf32>
    %160 = tpu.matmul %147, %159, %cst_59 {dimension_numbers = #tpu.dot_dimension_numbers<[1], [0], [0], [1], [0, 0, 1, 1], [], []>} : vector<16x16xf32>, vector<16x16xf32>, vector<16x16xf32> -> vector<16x16xf32>
    %161 = arith.subf %149, %160 : vector<16x16xf32>
    %cst_60 = arith.constant dense<0.000000e+00> : vector<16x16xf32>
    %162 = tpu.matmul %147, %161, %cst_60 {dimension_numbers = #tpu.dot_dimension_numbers<[1], [0], [0], [1], [0, 0, 1, 1], [], []>} : vector<16x16xf32>, vector<16x16xf32>, vector<16x16xf32> -> vector<16x16xf32>
    %163 = arith.subf %149, %162 : vector<16x16xf32>
    %cst_61 = arith.constant dense<0.000000e+00> : vector<16x16xf32>
    %164 = tpu.matmul %143, %141, %cst_61 {dimension_numbers = #tpu.dot_dimension_numbers<[1], [1], [0], [0], [0, 0, 1, 0], [], []>} : vector<16x16xf32>, vector<16x16xf32>, vector<16x16xf32> -> vector<16x16xf32>
    %165 = arith.mulf %164, %1 : vector<16x16xf32>
    %cst_62 = arith.constant dense<0.000000e+00> : vector<16x16xf32>
    %166 = tpu.matmul %165, %163, %cst_62 {dimension_numbers = #tpu.dot_dimension_numbers<[1], [0], [0], [1], [0, 0, 1, 1], [], []>} : vector<16x16xf32>, vector<16x16xf32>, vector<16x16xf32> -> vector<16x16xf32>
    %167 = arith.mulf %166, %166 : vector<16x16xf32>
    %cst_63 = arith.constant dense<0.000000e+00> : vector<16xf32>
    %168 = vector.multi_reduction <add>, %167, %cst_63 [1] : vector<16x16xf32> to vector<16xf32>
    %169 = vector.shape_cast %168 : vector<16xf32> to vector<16x1xf32>
    %cst_64 = arith.constant 1.600000e+01 : f32
    %170 = vector.broadcast %cst_64 : f32 to vector<16x1xf32>
    %171 = arith.divf %169, %170 : vector<16x1xf32>
    %cst_65 = arith.constant 9.99999974E-6 : f32
    %172 = vector.broadcast %cst_65 : f32 to vector<16x1xf32>
    %173 = arith.addf %171, %172 : vector<16x1xf32>
    %174 = math.rsqrt %173 : vector<16x1xf32>
    %175 = vector.broadcast %174 : vector<16x1xf32> to vector<16x16xf32>
    %176 = arith.mulf %166, %175 : vector<16x16xf32>
    %177 = vector.broadcast %96 : vector<1x16xf32> to vector<16x16xf32>
    %178 = arith.mulf %176, %177 : vector<16x16xf32>
    %cst_66 = arith.constant dense<0.000000e+00> : vector<16x16xf32>
    %179 = tpu.matmul %178, %97, %cst_66 {dimension_numbers = #tpu.dot_dimension_numbers<[1], [0], [0], [1], [0, 0, 1, 1], [], []>} : vector<16x16xf32>, vector<16x16xf32>, vector<16x16xf32> -> vector<16x16xf32>
    %cst_67 = arith.constant dense<0.000000e+00> : vector<16xf32>
    %180 = vector.multi_reduction <add>, %179, %cst_67 [1] : vector<16x16xf32> to vector<16xf32>
    %181 = vector.shape_cast %180 : vector<16xf32> to vector<16x1xf32>
    %cst_68 = arith.constant 1.600000e+01 : f32
    %182 = vector.broadcast %cst_68 : f32 to vector<16x1xf32>
    %183 = arith.divf %181, %182 : vector<16x1xf32>
    %184 = vector.broadcast %183 : vector<16x1xf32> to vector<16x16xf32>
    %185 = arith.subf %179, %184 : vector<16x16xf32>
    %186 = arith.mulf %185, %185 : vector<16x16xf32>
    %cst_69 = arith.constant dense<0.000000e+00> : vector<16xf32>
    %187 = vector.multi_reduction <add>, %186, %cst_69 [1] : vector<16x16xf32> to vector<16xf32>
    %188 = vector.shape_cast %187 : vector<16xf32> to vector<16x1xf32>
    %cst_70 = arith.constant 1.600000e+01 : f32
    %189 = vector.broadcast %cst_70 : f32 to vector<16x1xf32>
    %190 = arith.divf %188, %189 : vector<16x1xf32>
    %cst_71 = arith.constant 9.99999974E-6 : f32
    %191 = vector.broadcast %cst_71 : f32 to vector<16x1xf32>
    %192 = arith.addf %190, %191 : vector<16x1xf32>
    %193 = math.rsqrt %192 : vector<16x1xf32>
    %194 = vector.broadcast %193 : vector<16x1xf32> to vector<16x16xf32>
    %195 = arith.mulf %185, %194 : vector<16x16xf32>
    %c0_72 = arith.constant 0 : index
    %c0_73 = arith.constant 0 : index
    %196 = vector.load %arg10[%c0_72, %c0_73] : memref<1x16xf32, #tpu.memory_space<vmem>>, vector<1x16xf32>
    %197 = vector.broadcast %196 : vector<1x16xf32> to vector<16x16xf32>
    %198 = arith.mulf %195, %197 : vector<16x16xf32>
    %c0_74 = arith.constant 0 : index
    %c0_75 = arith.constant 0 : index
    %199 = vector.load %arg11[%c0_74, %c0_75] : memref<1x16xf32, #tpu.memory_space<vmem>>, vector<1x16xf32>
    %200 = vector.broadcast %199 : vector<1x16xf32> to vector<16x16xf32>
    %201 = arith.addf %198, %200 : vector<16x16xf32>
    %c0_76 = arith.constant 0 : index
    %c0_77 = arith.constant 0 : index
    %202 = vector.load %arg12[%c0_76, %c0_77] : memref<16x16xf32, #tpu.memory_space<vmem>>, vector<16x16xf32>
    %cst_78 = arith.constant dense<0.000000e+00> : vector<16x16xf32>
    %203 = tpu.matmul %201, %202, %cst_78 {dimension_numbers = #tpu.dot_dimension_numbers<[1], [0], [0], [1], [0, 0, 1, 1], [], []>} : vector<16x16xf32>, vector<16x16xf32>, vector<16x16xf32> -> vector<16x16xf32>
    %c0_79 = arith.constant 0 : index
    %c0_80 = arith.constant 0 : index
    %204 = vector.load %arg13[%c0_79, %c0_80] : memref<16x16xf32, #tpu.memory_space<vmem>>, vector<16x16xf32>
    tpu.vector_store %arg13[%c0_79, %c0_80], %203 {strides = array<i32>} : memref<16x16xf32, #tpu.memory_space<vmem>>, vector<16x16xf32>,
    return
  }
}

</mosaic_0001>

<bundles_post_ra>
// kernel: tpu_custom_call.1
= control target key start
LH: loop header
LB: loop body
LE: loop exit
PB: predicated region body
PF: predicated region fallthrough
CT: control target
= control target key end

     0   :  { %18 = vsyncpa [#allocation3], 0  ;;  %s3973_s0 = inlined_call_operand.vmem [shape: s32[16,1], index: 0, kind: input, shape index: {}]   ;;  %s3974_s1 = inlined_call_operand.vmem [shape: f32[16,16], index: 1, kind: input, shape index: {}]   ;;  %s3975_s2 = inlined_call_operand.hbm [shape: f32[16,16], index: 2, kind: input, shape index: {}]   ;;  %s3976_s3 = inlined_call_operand.hbm [shape: f32[16,16], index: 3, kind: input, shape index: {}]   ;;  %s3977_s4 = inlined_call_operand.vmem [shape: f32[16,49], index: 4, kind: input, shape index: {}]   ;;  %s3978_s5 = inlined_call_operand.vmem [shape: f32[1,16], index: 5, kind: input, shape index: {}]   ;;  %s3979_s6 = inlined_call_operand.hbm [shape: f32[16,16], index: 6, kind: input, shape index: {}]   ;;  %s3980_s7 = inlined_call_operand.hbm [shape: f32[16,49], index: 7, kind: input, shape index: {}]   ;;  %s3981_s8 = inlined_call_operand.vmem [shape: f32[1,16], index: 8, kind: input, shape index: {}]   ;;  %s3982_s9 = inlined_call_operand.vmem [shape: f32[16,16], index: 9, kind: input, shape index: {}]   ;;  %s3983_s10 = inlined_call_operand.vmem [shape: f32[1,16], index: 10, kind: input, shape index: {}]   ;;  %s3984_s11 = inlined_call_operand.vmem [shape: f32[1,16], index: 11, kind: input, shape index: {}]   ;;  %s3985_s12 = inlined_call_operand.hbm [shape: f32[16,16], index: 12, kind: input, shape index: {}]   ;;  %s3986_s13 = inlined_call_operand.hbm [shape: f32[16,16], index: 13, kind: output, shape index: {}]  }
   0x1   :  { %19 = vsyncpa [#allocation6], 0 }
   0x2   :  { %20 = vsyncpa [#allocation9], 0 }
   0x3   :  { %21 = vsyncpa [#allocation4], 0  ;;  %s3457_s25 = smov [#allocation5]   ;;  %s3458_s27 = smov [#allocation8]  }
   0x4   :  { %s43_s26 = sshll.u32 %s3457_s25, 4  ;;  %s71_s28 = sshll.u32 %s3458_s27, 4  ;;  %s44_s26 = int_to_ptr.vmem [resolvable:$true] %s43_s26  ;;  %s3541_s28 = int_to_ptr.vmem [resolvable:$true] %s71_s28 }
   0x5   :  { %s3317_s14 = scalar_lea.hbm %s3976_s3, 256 }
   0x6   :  { %p3318_p0 = scmp.ne.s32.totalorder %s3976_s3, %s3317_s14  ;;  %p3321_p1 = scmp.lt.u32.totalorder %s3317_s14, %s3976_s3 }
   0x8   :  { %p3323_p2 = pnand %p3321_p1, %p3318_p0 }
   0xa   :  { %3326 = shalt.err (!%p3323_p2)
}
   0xb   :  { %s3327_s19 = scalar_lea.vmem %s44_s26, 256  ;;  %p3332_p4 = scmp.lt.s32.totalorder %s44_s26, %s44_s26 }
   0xc   :  { %p3328_p3 = scmp.ne.s32.totalorder %s44_s26, %s3327_s19  ;;  %p3333_p5 = scmp.lt.s32.totalorder %s3327_s19, %s3327_s19 }
   0xe   :  { %p3334_p6 = por %p3333_p5, %p3332_p4 }
  0x10   :  { %p3335_p7 = pnand %p3334_p6, %p3328_p3 }
  0x12   :  { %3338 = shalt.err (!%p3335_p7)
}
  0x13   :  { %s3459_s20 = smov 128   ;;  %s3460_s21 = smov 8  }
  0x14   :  { %49 = dma.hbm_to_vmem [thread:$0]  %s3976_s3, 256, %s44_s26, [#allocation6], %s3459_s20, %s3459_s20, %s3460_s21  }
  0x15   :  { %s3339_s27 = scalar_lea.hbm %s3980_s7, 256 }
  0x16   :  { %p3340_p8 = scmp.ne.s32.totalorder %s3980_s7, %s3339_s27  ;;  %p3343_p9 = scmp.lt.u32.totalorder %s3339_s27, %s3980_s7 }
  0x18   :  { %p3345_p10 = pnand %p3343_p9, %p3340_p8 }
  0x1a   :  { %3348 = shalt.err (!%p3345_p10)
}
  0x1b   :  { %s3349_s16 = scalar_lea.vmem %s3541_s28, 256  ;;  %p3354_p12 = scmp.lt.s32.totalorder %s3541_s28, %s3541_s28 }
  0x1c   :  { %p3350_p11 = scmp.ne.s32.totalorder %s3541_s28, %s3349_s16  ;;  %p3355_p13 = scmp.lt.s32.totalorder %s3349_s16, %s3349_s16 }
  0x1e   :  { %p3356_p0 = por %p3355_p13, %p3354_p12 }
  0x20   :  { %p3357_p1 = pnand %p3356_p0, %p3350_p11 }
  0x22   :  { %3360 = shalt.err (!%p3357_p1)
}
  0x23   :  { %77 = dma.hbm_to_vmem [thread:$0]  %s3980_s7, 256, %s3541_s28, [#allocation9], %s3459_s20, %s3459_s20, %s3460_s21  }
  0x24   :  { %s3461_s17 = smov [#allocation2]   ;;  %s3462_s19 = smov [#allocation7]  }
  0x25   :  { %s31_s18 = sshll.u32 %s3461_s17, 4  ;;  %s59_s22 = sshll.u32 %s3462_s19, 4  ;;  %s32_s18 = int_to_ptr.vmem [resolvable:$true] %s31_s18  ;;  %s3578_s22 = int_to_ptr.vmem [resolvable:$true] %s59_s22 }
  0x26   :  { %s3361_s25 = scalar_lea.hbm %s3975_s2, 256 }
  0x27   :  { %p3362_p2 = scmp.ne.s32.totalorder %s3975_s2, %s3361_s25  ;;  %p3365_p3 = scmp.lt.u32.totalorder %s3361_s25, %s3975_s2 }
  0x29   :  { %p3367_p4 = pnand %p3365_p3, %p3362_p2 }
  0x2b   :  { %3370 = shalt.err (!%p3367_p4)
}
  0x2c   :  { %s3371_s7 = scalar_lea.vmem %s32_s18, 256  ;;  %p3376_p6 = scmp.lt.s32.totalorder %s32_s18, %s32_s18 }
  0x2d   :  { %p3372_p5 = scmp.ne.s32.totalorder %s32_s18, %s3371_s7  ;;  %p3377_p7 = scmp.lt.s32.totalorder %s3371_s7, %s3371_s7 }
  0x2f   :  { %p3378_p8 = por %p3377_p7, %p3376_p6 }
  0x31   :  { %p3379_p9 = pnand %p3378_p8, %p3372_p5 }
  0x33   :  { %3382 = shalt.err (!%p3379_p9)
}
  0x34   :  { %37 = dma.hbm_to_vmem [thread:$0]  %s3975_s2, 256, %s32_s18, [#allocation3], %s3459_s20, %s3459_s20, %s3460_s21  }
  0x35   :  { %s3383_s26 = scalar_lea.hbm %s3979_s6, 256 }
  0x36   :  { %p3384_p10 = scmp.ne.s32.totalorder %s3979_s6, %s3383_s26  ;;  %p3387_p11 = scmp.lt.u32.totalorder %s3383_s26, %s3979_s6 }
  0x38   :  { %p3389_p12 = pnand %p3387_p11, %p3384_p10 }
  0x3a   :  { %3392 = shalt.err (!%p3389_p12)
}
  0x3b   :  { %s3393_s25 = scalar_lea.vmem %s3578_s22, 256  ;;  %p3398_p0 = scmp.lt.s32.totalorder %s3578_s22, %s3578_s22 }
  0x3c   :  { %p3394_p13 = scmp.ne.s32.totalorder %s3578_s22, %s3393_s25  ;;  %p3399_p1 = scmp.lt.s32.totalorder %s3393_s25, %s3393_s25 }
  0x3e   :  { %p3400_p2 = por %p3399_p1, %p3398_p0 }
  0x40   :  { %p3401_p3 = pnand %p3400_p2, %p3394_p13 }
  0x42   :  { %3404 = shalt.err (!%p3401_p3)
}
  0x43   :  { %65 = dma.hbm_to_vmem [thread:$0]  %s3979_s6, 256, %s3578_s22, [#allocation6], %s3459_s20, %s3459_s20, %s3460_s21  }
  0x44   :  { %s3463_s27 = smov [#allocation10]   ;;  %s3405_s7 = scalar_lea.hbm %s3985_s12, 256 }
  0x45   :  { %s91_s29 = sshll.u32 %s3463_s27, 4  ;;  %p3406_p4 = scmp.ne.s32.totalorder %s3985_s12, %s3405_s7  ;;  %s92_s29 = int_to_ptr.vmem [resolvable:$true] %s91_s29 }
  0x46   :  { %p3409_p5 = scmp.lt.u32.totalorder %s3405_s7, %s3985_s12 }
  0x48   :  { %p3411_p6 = pnand %p3409_p5, %p3406_p4 }
  0x4a   :  { %3414 = shalt.err (!%p3411_p6)
}
  0x4b   :  { %s3415_s26 = scalar_lea.vmem %s92_s29, 256  ;;  %p3420_p8 = scmp.lt.s32.totalorder %s92_s29, %s92_s29 }
  0x4c   :  { %p3416_p7 = scmp.ne.s32.totalorder %s92_s29, %s3415_s26  ;;  %p3421_p9 = scmp.lt.s32.totalorder %s3415_s26, %s3415_s26 }
  0x4e   :  { %p3422_p10 = por %p3421_p9, %p3420_p8 }
  0x50   :  { %p3423_p11 = pnand %p3422_p10, %p3416_p7 }
  0x52   :  { %3426 = shalt.err (!%p3423_p11)
}
  0x53   :  { %97 = dma.hbm_to_vmem [thread:$0]  %s3985_s12, 256, %s92_s29, [#allocation9], %s3459_s20, %s3459_s20, %s3460_s21  }
  0x54   :  { %3449 = dma.done.wait [#allocation3], 256  }
  0x55   :  { %3450 = vsyncadd [#allocation3], 4294967040 }
  0x56   :  { %3451 = dma.done.wait [#allocation6], 512  }
  0x57   :  { %3452 = vsyncadd [#allocation6], 4294966784 }
  0x58   :  { %3453 = dma.done.wait [#allocation9], 512  }
  0x59   :  { %3454 = vsyncadd [#allocation9], 4294966784  ;;  %v3464_v0 = vmov 0   ;;  %v117_v1 = vld [vmem:[%s3973_s0] sm:$0xff]  ;;  %v134_v3 = vld [vmem:[#allocation5 + $0x8] sm:$0xff]  ;;  %v119_v9 = vlaneseq  ;;  %vm135_vm0 = vcmask 130048  }
  0x5a   :  { %3190 = vset.pattern.permute.xlu0 %v3464_v0  ;;  %v133_v2 = vld [vmem:[#allocation5] sm:$0xff]  ;;  %v118_v4 = vld [vmem:[%s3973_s0 + $0x8] sm:$0xff]  ;;  %v3465_v12 = vmov 0.0   ;;  %s3466_s0 = smov 112   ;;  %v3467_v36 = vmov 48   ;;  %vm3671_vm3 = vmpackc.low %vm135_vm0, %vm135_vm0  ;;  %s3470_s19 = smov [#allocation11]  }
  0x5b   :  { %122 = vperm.xlu0 %3190, %v117_v1   ;;  %v3064_v5 = vpack.c.bf16 %v134_v3, %v133_v2  ;;  %v217_v6 = vld [vmem:[%s3977_s4] sm:$0xff]  ;;  %v218_v7 = vld [vmem:[%s3977_s4 + $0x8] sm:$0xff]  ;;  %v120_v10 = vand.u32 127, %v119_v9  ;;  %3192 = vset.pattern.permute.xlu1 %v3467_v36  ;;  %s3468_s4 = smov 96   ;;  %s2694_s23 = sshll.u32 %s3470_s19, 4  ;;  %s2695_s23 = int_to_ptr.vmem [resolvable:$true] %s2694_s23 }
  0x5c   :  { %v3068_v8 = vpack.c.bf16 %v218_v7, %v217_v6  ;;  %v3696_v60 = vld [vmem:[%s3974_s1] sm:$0xff]  ;;  %v3701_v62 = vld [vmem:[%s3974_s1 + $0x8] sm:$0xff]  ;;  %s3469_s1 = smov 32   ;;  %p3432_p13 = scmp.lt.s32.totalorder %s2695_s23, %s2695_s23 }
  0x5d   :  { %3065 = vmatprep.subr.bf16.mxu0 %v3064_v5 }
  0x5e   :  { %3067 = vmatpush3.bf16.msra.mxu0 %v3064_v5  ;;  %3069 = vmatprep.subr.bf16.mxu1 %v3068_v8 }
  0x5f   :  { %125 = vperm.xlu0 %3190, %v118_v4   ;;  %3071 = vmatpush3.bf16.msra.mxu1 %v3068_v8 }
  0x63   :  { %3191 = vset.pattern.permute.xlu0 %v3467_v36 }
  0xda   :  { %v123_v11 = vpop.permute.xlu0 %122 }
  0xdb   :  { %vm127_vm1 = vcmp.eq.s32.totalorder %v120_v10, %v123_v11 }
  0xdc   :  { %v2708_v13 = vsel %vm127_vm1, 1.0, %v3465_v12 }
  0xdd   :  { %2886 = vmatprep.mubr.msk.f32.mxu0 %vm135_vm0, %v2708_v13 }
  0xde   :  { %v126_v14 = vpop.permute.xlu0 %125 }
  0xdf   :  { %vm128_vm2 = vcmp.eq.s32.totalorder %v120_v10, %v126_v14 }
  0xe0   :  { %v2709_v15 = vsel %vm128_vm2, 1.0, %v3465_v12 }
  0xe1   :  { %2887 = vmatmul.mubr.msk.f32.vlgmr.msra.gmra.mrb[0].mxu0 %vm135_vm0, %v2709_v15 }
 0x1b4   :  { %v2888_v16 = vpop.f32.mrb[0].mxu0 }
 0x1b5   :  { %v208_v17 = vpop.f32.mrb[1].mxu0 }
 0x1b6   :  { %2893 = vmatprep.mubr.msk.f32.mxu1 %vm135_vm0, %v208_v17 }
 0x1b7   :  { %2894 = vmatmul.mubr.msk.f32.vlgmr.msra.gmra.mrb[0].mxu1 %vm135_vm0, %v2888_v16 }
 0x28a   :  { %v2895_v18 = vpop.f32.mrb[0].mxu1 }
 0x28b   :  { %v2715_v19 = vmul.f32 -1.442695, %v2895_v18  ;;  %v294_v20 = vpop.f32.mrb[1].mxu1 }
 0x28c   :  { %v2714_v21 = vmul.f32 -1.442695, %v294_v20 }
 0x28d   :  { %3273 = vpow2.f32 %v2715_v19 }
 0x28e   :  { %3275 = vpow2.f32 %v2714_v21 }
 0x297   :  { %v3274_v22 = vpop.eup %3273 }
 0x298   :  { %v3276_v23 = vpop.eup %3275  ;;  %v310_v24 = vadd.f32 1.0, %v3274_v22 }
 0x299   :  { %v309_v25 = vadd.f32 1.0, %v3276_v23 }
 0x29a   :  { %3277 = vrcp.f32 %v310_v24 }
 0x29b   :  { %3279 = vrcp.f32 %v309_v25 }
 0x2a4   :  { %v3278_v26 = vpop.eup %3277 }
 0x2a5   :  { %v3280_v27 = vpop.eup %3279  ;;  %v3648_v29 = vmul.f32 %v3278_v26, %v2895_v18 }
 0x2a6   :  { %v3646_v28 = vmul.f32 %v3280_v27, %v294_v20 }
 0x2a7   :  { %v3658_v31 = vmul.f32 %v3648_v29, %v3648_v29 }
 0x2a8   :  { %v3652_v30 = vmul.f32 %v3646_v28, %v3646_v28 }
 0x2aa   :  { %333 = vrot.lane.b32.xlu1 %v3652_v30, %s3466_s0 }
 0x2ae   :  { %335 = vrot.lane.b32.xlu1 %v3658_v31, %s3466_s0 }
 0x31c   :  { %v334_v32 = vpop.permute.xlu1 %333 }
 0x31d   :  { %v339_v33 = vsel %vm135_vm0, %v334_v32, 0.0 }
 0x31e   :  { %340 = vadd.xlane.f32.xlu0 %v339_v33 }
 0x320   :  { %v336_v34 = vpop.permute.xlu1 %335 }
 0x321   :  { %v342_v35 = vsel %vm135_vm0, %v336_v34, 0.0 }
 0x322   :  { %343 = vadd.xlane.f32.xlu1 %v342_v35 }
 0x3ab   :  { %v341_v37 = vpop.xlane.xlu0 %340 }
 0x3ac   :  { %v345_v38 = vadd.f32 1e-06, %v341_v37 }
 0x3ae   :  { %3281 = vrsqrt.f32 %v345_v38 }
 0x3af   :  { %v344_v39 = vpop.xlane.xlu1 %343 }
 0x3b0   :  { %v346_v40 = vadd.f32 1e-06, %v344_v39 }
 0x3b2   :  { %3283 = vrsqrt.f32 %v346_v40 }
 0x3b8   :  { %v3282_v41 = vpop.eup %3281 }
 0x3b9   :  { %v349_v42 = vmul.f32 %v3282_v41, %v3646_v28 }
 0x3bb   :  { %355 = vrot.lane.b32.xlu0 %v349_v42, %s3466_s0 }
 0x3bc   :  { %v3284_v43 = vpop.eup %3283 }
 0x3bd   :  { %v350_v44 = vmul.f32 %v3284_v43, %v3648_v29 }
 0x3bf   :  { %440 = vperm.xlu0 %3191, %v3280_v27   ;;  %357 = vrot.lane.b32.xlu1 %v350_v44, %s3466_s0 }
 0x3c3   :  { %445 = vperm.xlu1 %3192, %v3278_v26  }
 0x42d   :  { %v356_v45 = vpop.permute.xlu0 %355 }
 0x42e   :  { %2900 = vmatprep.mubr.msk.f32.mxu0 %vm135_vm0, %v356_v45 }
 0x431   :  { %v358_v46 = vpop.permute.xlu1 %357 }
 0x432   :  { %v3675_v48 = vpack.c.bf16 %v358_v46, %v356_v45 }
 0x434   :  { %3074 = vmatprep.subr.msk.bf16.mxu0 %vm3671_vm3, %v3675_v48 }
 0x435   :  { %3077 = vmatpush3.bf16.xpose.msk.msra.mxu0 %vm3671_vm3, %v3675_v48 }
 0x43c   :  { %2901 = vmatmul.mubr.msk.f32.vlgmr.msra.gmra.mrb[2].mxu0 %vm135_vm0, %v358_v46 }
 0x43e   :  { %v441_v49 = vpop.permute.xlu0 %440 }
 0x43f   :  { %v3685_v51 = vmul.f32 %v441_v49, %v3646_v28 }
 0x442   :  { %v446_v50 = vpop.permute.xlu1 %445 }
 0x443   :  { %v3688_v52 = vmul.f32 %v446_v50, %v3648_v29 }
 0x445   :  { %v3193_v53 = vpack.i.bf16 %v3688_v52, %v3685_v51 }
 0x447   :  { %3194 = vrot.lane.b32.xlu1 %v3193_v53, %s3468_s4 }
 0x4b9   :  { %v3195_v54 = vpop.permute.xlu1 %3194 }
 0x4ba   :  { %v3197_v55 = vunpack.i.h.bf16 %v3195_v54  ;;  %v3196_v56 = vunpack.i.l.bf16 %v3195_v54 }
 0x4bc   :  { %v3078_v57 = vpack.c.bf16 %v3197_v55, %v3196_v56 }
 0x4be   :  { %3079 = vmatprep.subr.bf16.mxu1 %v3078_v57 }
 0x4bf   :  { %3081 = vmatpush3.bf16.msra.mxu1 %v3078_v57 }
 0x50f   :  { %v2902_v58 = vpop.f32.mrb[2].mxu0 }
 0x510   :  { %v449_v59 = vmul.f32 %v2902_v58, %v446_v50  ;;  %v429_v61 = vpop.f32.mrb[3].mxu0 }
 0x511   :  { %v448_v63 = vmul.f32 %v441_v49, %v429_v61 }
 0x512   :  { %v3707_v1 = vmul.f32 %v449_v59, %v3701_v62 }
 0x513   :  { %v3704_v0 = vmul.f32 %v448_v63, %v3696_v60 }
 0x515   :  { %2907 = vmatprep.mubr.msk.f32.mxu1 %vm135_vm0, %v3704_v0  ;;  %2921 = vmatprep.mubr.msk.f32.mxu0 %vm135_vm0, %v3704_v0 }
 0x516   :  { %2908 = vmatmul.mubr.msk.f32.vlgmr.msra.gmra.mrb[2].mxu1 %vm135_vm0, %v3707_v1 }
 0x517   :  { %2914 = vmatprep.mubr.msk.f32.mxu1 %vm135_vm0, %v3704_v0 }
 0x5e9   :  { %v2909_v2 = vpop.f32.mrb[2].mxu1 }
 0x5ea   :  { %547 = vrot.lane.b32.xlu1 %v2909_v2, %s3469_s1  ;;  %v534_v3 = vpop.f32.mrb[3].mxu1 }
 0x5eb   :  { %545 = vrot.lane.b32.xlu0 %v534_v3, %s3469_s1 }
 0x65c   :  { %v548_v4 = vpop.permute.xlu1 %547 }
 0x65d   :  { %v552_v5 = vsub.f32 %v3688_v52, %v548_v4  ;;  %v546_v6 = vpop.permute.xlu0 %545 }
 0x65e   :  { %v551_v7 = vsub.f32 %v3685_v51, %v546_v6  ;;  %v319_v6 = vsel %vm135_vm0, %v3652_v30, 0.0 }
 0x660   :  { %v3198_v8 = vpack.i.bf16 %v552_v5, %v551_v7 }
 0x662   :  { %3199 = vrot.lane.b32.xlu0 %v3198_v8, %s3468_s4 }
 0x6d4   :  { %v3200_v9 = vpop.permute.xlu0 %3199 }
 0x6d5   :  { %v3202_v10 = vunpack.i.h.bf16 %v3200_v9  ;;  %v3201_v11 = vunpack.i.l.bf16 %v3200_v9 }
 0x6d7   :  { %v3082_v12 = vpack.c.bf16 %v3202_v10, %v3201_v11 }
 0x6d9   :  { %3083 = vmatprep.subr.bf16.mxu1 %v3082_v12 }
 0x6da   :  { %3085 = vmatpush3.bf16.msra.mxu1 %v3082_v12 }
 0x6dd   :  { %2915 = vmatmul.mubr.msk.f32.vlgmr.msra.gmra.mrb[4].mxu1 %vm135_vm0, %v3707_v1 }
 0x6de   :  { %2928 = vmatprep.mubr.msk.f32.mxu1 %vm135_vm0, %v3704_v0 }
 0x7b0   :  { %v2916_v13 = vpop.f32.mrb[4].mxu1 }
 0x7b1   :  { %640 = vrot.lane.b32.xlu0 %v2916_v13, %s3469_s1  ;;  %v627_v14 = vpop.f32.mrb[5].mxu1 }
 0x7b2   :  { %638 = vrot.lane.b32.xlu1 %v627_v14, %s3469_s1 }
 0x823   :  { %v641_v15 = vpop.permute.xlu0 %640 }
 0x824   :  { %v645_v16 = vsub.f32 %v3688_v52, %v641_v15  ;;  %v639_v17 = vpop.permute.xlu1 %638 }
 0x825   :  { %v644_v18 = vsub.f32 %v3685_v51, %v639_v17 }
 0x827   :  { %v3203_v19 = vpack.i.bf16 %v645_v16, %v644_v18 }
 0x829   :  { %3204 = vrot.lane.b32.xlu1 %v3203_v19, %s3468_s4 }
 0x89b   :  { %v3205_v20 = vpop.permute.xlu1 %3204 }
 0x89c   :  { %v3207_v21 = vunpack.i.h.bf16 %v3205_v20  ;;  %v3206_v22 = vunpack.i.l.bf16 %v3205_v20 }
 0x89e   :  { %v3086_v23 = vpack.c.bf16 %v3207_v21, %v3206_v22 }
 0x8a0   :  { %3087 = vmatprep.subr.bf16.mxu0 %v3086_v23 }
 0x8a1   :  { %3089 = vmatpush3.bf16.msra.mxu0 %v3086_v23 }
 0x8a4   :  { %2922 = vmatmul.mubr.msk.f32.vlgmr.msra.gmra.mrb[4].mxu0 %vm135_vm0, %v3707_v1 }
 0x8a5   :  { %2935 = vmatprep.mubr.msk.f32.mxu0 %vm135_vm0, %v3704_v0 }
 0x977   :  { %v2923_v24 = vpop.f32.mrb[4].mxu0 }
 0x978   :  { %733 = vrot.lane.b32.xlu1 %v2923_v24, %s3469_s1  ;;  %v720_v25 = vpop.f32.mrb[5].mxu0 }
 0x979   :  { %731 = vrot.lane.b32.xlu0 %v720_v25, %s3469_s1  ;;  %v3783_v25 = vld [vmem:[#allocation2] sm:$0xff] }
 0x9ea   :  { %v734_v26 = vpop.permute.xlu1 %733 }
 0x9eb   :  { %v738_v27 = vsub.f32 %v3688_v52, %v734_v26  ;;  %v732_v32 = vpop.permute.xlu0 %731 }
 0x9ec   :  { %v737_v33 = vsub.f32 %v3685_v51, %v732_v32 }
 0x9ee   :  { %v3208_v34 = vpack.i.bf16 %v738_v27, %v737_v33 }
 0x9f0   :  { %3209 = vrot.lane.b32.xlu0 %v3208_v34, %s3468_s4 }
 0xa62   :  { %v3210_v35 = vpop.permute.xlu0 %3209 }
 0xa63   :  { %v3212_v36 = vunpack.i.h.bf16 %v3210_v35  ;;  %v3211_v37 = vunpack.i.l.bf16 %v3210_v35 }
 0xa65   :  { %v3090_v38 = vpack.c.bf16 %v3212_v36, %v3211_v37 }
 0xa67   :  { %3091 = vmatprep.subr.bf16.mxu1 %v3090_v38 }
 0xa68   :  { %3093 = vmatpush3.bf16.msra.mxu1 %v3090_v38 }
 0xa6b   :  { %2929 = vmatmul.mubr.msk.f32.vlgmr.msra.gmra.mrb[6].mxu1 %vm135_vm0, %v3707_v1 }
 0xa6c   :  { %2942 = vmatprep.mubr.msk.f32.mxu1 %vm135_vm0, %v3704_v0 }
 0xb3e   :  { %v2930_v39 = vpop.f32.mrb[6].mxu1 }
 0xb3f   :  { %826 = vrot.lane.b32.xlu0 %v2930_v39, %s3469_s1  ;;  %v813_v40 = vpop.f32.mrb[7].mxu1 }
 0xb40   :  { %824 = vrot.lane.b32.xlu1 %v813_v40, %s3469_s1  ;;  %v3790_v40 = vld [vmem:[#allocation2 + $0x8] sm:$0xff] }
 0xbb1   :  { %v827_v41 = vpop.permute.xlu0 %826 }
 0xbb2   :  { %v831_v42 = vsub.f32 %v3688_v52, %v827_v41  ;;  %v825_v43 = vpop.permute.xlu1 %824 }
 0xbb3   :  { %v830_v44 = vsub.f32 %v3685_v51, %v825_v43 }
 0xbb5   :  { %v3213_v45 = vpack.i.bf16 %v831_v42, %v830_v44 }
 0xbb7   :  { %3214 = vrot.lane.b32.xlu1 %v3213_v45, %s3468_s4 }
 0xc29   :  { %v3215_v46 = vpop.permute.xlu1 %3214 }
 0xc2a   :  { %v3217_v49 = vunpack.i.h.bf16 %v3215_v46  ;;  %v3216_v50 = vunpack.i.l.bf16 %v3215_v46  ;;  %v220_v46 = vld [vmem:[#allocation7] sm:$0xff] }
 0xc2c   :  { %v3094_v53 = vpack.c.bf16 %v3217_v49, %v3216_v50  ;;  %v221_v49 = vld [vmem:[#allocation7 + $0x8] sm:$0xff] }
 0xc2d   :  { %v3116_v50 = vpack.c.bf16 %v221_v49, %v220_v46 }
 0xc2e   :  { %3095 = vmatprep.subr.bf16.mxu0 %v3094_v53 }
 0xc2f   :  { %3097 = vmatpush3.bf16.msra.mxu0 %v3094_v53  ;;  %v1389_v53 = vld [vmem:[#allocation8] sm:$0xff] }
 0xc32   :  { %2936 = vmatmul.mubr.msk.f32.vlgmr.msra.gmra.mrb[6].mxu0 %vm135_vm0, %v3707_v1 }
 0xc33   :  { %2949 = vmatprep.mubr.msk.f32.mxu0 %vm135_vm0, %v3704_v0 }
 0xd05   :  { %v2937_v54 = vpop.f32.mrb[6].mxu0 }
 0xd06   :  { %919 = vrot.lane.b32.xlu1 %v2937_v54, %s3469_s1  ;;  %v906_v55 = vpop.f32.mrb[7].mxu0  ;;  %v1390_v54 = vld [vmem:[#allocation8 + $0x8] sm:$0xff] }
 0xd07   :  { %917 = vrot.lane.b32.xlu0 %v906_v55, %s3469_s1  ;;  %v3120_v55 = vpack.c.bf16 %v1390_v54, %v1389_v53 }
 0xd78   :  { %v920_v56 = vpop.permute.xlu1 %919 }
 0xd79   :  { %v924_v57 = vsub.f32 %v3688_v52, %v920_v56  ;;  %v918_v58 = vpop.permute.xlu0 %917 }
 0xd7a   :  { %v923_v59 = vsub.f32 %v3685_v51, %v918_v58 }
 0xd7c   :  { %v3218_v61 = vpack.i.bf16 %v924_v57, %v923_v59 }
 0xd7e   :  { %3219 = vrot.lane.b32.xlu0 %v3218_v61, %s3468_s4 }
 0xdf0   :  { %v3220_v63 = vpop.permute.xlu0 %3219 }
 0xdf1   :  { %v3222_v2 = vunpack.i.h.bf16 %v3220_v63  ;;  %v3221_v3 = vunpack.i.l.bf16 %v3220_v63 }
 0xdf3   :  { %v3098_v4 = vpack.c.bf16 %v3222_v2, %v3221_v3 }
 0xdf5   :  { %3099 = vmatprep.subr.bf16.mxu1 %v3098_v4 }
 0xdf6   :  { %3101 = vmatpush3.bf16.msra.mxu1 %v3098_v4  ;;  %v2740_v4 = vld [vmem:[%s3978_s5] ss:$0 sm:$0xff] }
 0xdf7   :  { %3108 = vmatprep.subr.msk.bf16.mxu1 %vm3671_vm3, %v3675_v48 }
 0xdf9   :  { %2943 = vmatmul.mubr.msk.f32.vlgmr.msra.gmra.mrb[8].mxu1 %vm135_vm0, %v3707_v1 }
 0xdff   :  { %3111 = vmatpush3.bf16.xpose.msk.msra.mxu1 %vm3671_vm3, %v3675_v48  ;;  %v322_v48 = vsel %vm135_vm0, %v3658_v31, 0.0 }
 0xe00   :  { %3121 = vmatprep.subr.bf16.mxu1 %v3120_v55 }
 0xecc   :  { %v2944_v0 = vpop.f32.mrb[8].mxu1 }
 0xecd   :  { %1012 = vrot.lane.b32.xlu0 %v2944_v0, %s3469_s1  ;;  %v999_v5 = vpop.f32.mrb[9].mxu1 }
 0xece   :  { %1010 = vrot.lane.b32.xlu1 %v999_v5, %s3469_s1 }
 0xeec   :  { %320 = vadd.xlane.f32.xlu0 %v319_v6 }
 0xf3f   :  { %v1013_v7 = vpop.permute.xlu0 %1012 }
 0xf40   :  { %v1017_v8 = vsub.f32 %v3688_v52, %v1013_v7  ;;  %v1011_v9 = vpop.permute.xlu1 %1010 }
 0xf41   :  { %v1016_v10 = vsub.f32 %v3685_v51, %v1011_v9 }
 0xf43   :  { %v3223_v11 = vpack.i.bf16 %v1017_v8, %v1016_v10 }
 0xf45   :  { %3224 = vrot.lane.b32.xlu1 %v3223_v11, %s3468_s4 }
 0xf69   :  { %323 = vadd.xlane.f32.xlu1 %v322_v48 }
 0xf79   :  { %v321_v12 = vpop.xlane.xlu0 %320 }
 0xf7a   :  { %v325_v13 = vadd.f32 1e-06, %v321_v12 }
 0xf7c   :  { %3285 = vrsqrt.f32 %v325_v13 }
 0xf86   :  { %v3286_v14 = vpop.eup %3285 }
 0xf87   :  { %v329_v30 = vmul.f32 %v3286_v14, %v3646_v28 }
 0xf89   :  { %v351_v15 = vmul.f32 0.25, %v329_v30 }
 0xf8b   :  { %2956 = vmatprep.mubr.msk.f32.mxu1 %vm135_vm0, %v351_v15 }
 0xfb7   :  { %v3225_v16 = vpop.permute.xlu1 %3224 }
 0xfb8   :  { %v3227_v17 = vunpack.i.h.bf16 %v3225_v16  ;;  %v3226_v18 = vunpack.i.l.bf16 %v3225_v16 }
 0xfba   :  { %v3102_v19 = vpack.c.bf16 %v3227_v17, %v3226_v18 }
 0xfbc   :  { %3103 = vmatprep.subr.bf16.mxu0 %v3102_v19 }
 0xfbd   :  { %3105 = vmatpush3.bf16.msra.mxu0 %v3102_v19 }
 0xfc0   :  { %2950 = vmatmul.mubr.msk.f32.vlgmr.msra.gmra.mrb[8].mxu0 %vm135_vm0, %v3707_v1 }
 0xff6   :  { %v324_v31 = vpop.xlane.xlu1 %323 }
 0xff7   :  { %v326_v20 = vadd.f32 1e-06, %v324_v31 }
 0xff9   :  { %3287 = vrsqrt.f32 %v326_v20 }
0x1003   :  { %v3288_v21 = vpop.eup %3287 }
0x1004   :  { %v330_v22 = vmul.f32 %v3288_v21, %v3648_v29 }
0x1006   :  { %v352_v23 = vmul.f32 0.25, %v330_v22 }
0x1008   :  { %2957 = vmatmul.mubr.msk.f32.vlgmr.msra.gmra.mrb[10].mxu1 %vm135_vm0, %v352_v23 }
0x1009   :  { %3123 = vmatpush3.bf16.msra.mxu1 %v3120_v55 }
0x1093   :  { %v2951_v28 = vpop.f32.mrb[8].mxu0 }
0x1094   :  { %1105 = vrot.lane.b32.xlu1 %v2951_v28, %s3469_s1  ;;  %v1092_v24 = vpop.f32.mrb[9].mxu0 }
0x1095   :  { %1103 = vrot.lane.b32.xlu0 %v1092_v24, %s3469_s1 }
0x10db   :  { %v2958_v26 = vpop.f32.mrb[10].mxu1 }
0x10dc   :  { %v1183_v27 = vpop.f32.mrb[11].mxu1  ;;  %v1193_v41 = vmul.f32 %v2958_v26, %v3790_v40 }
0x10dd   :  { %v1192_v1 = vmul.f32 %v1183_v27, %v3783_v25 }
0x10df   :  { %2963 = vmatprep.mubr.msk.f32.mxu0 %vm135_vm0, %v1192_v1 }
0x1106   :  { %v1106_v32 = vpop.permute.xlu1 %1105 }
0x1107   :  { %v1110_v29 = vsub.f32 %v3688_v52, %v1106_v32  ;;  %v1104_v33 = vpop.permute.xlu0 %1103 }
0x1108   :  { %v1109_v34 = vsub.f32 %v3685_v51, %v1104_v33 }
0x110a   :  { %v3228_v35 = vpack.i.bf16 %v1110_v29, %v1109_v34 }
0x110c   :  { %3229 = vrot.lane.b32.xlu0 %v3228_v35, %s3468_s4 }
0x117e   :  { %v3230_v36 = vpop.permute.xlu0 %3229 }
0x117f   :  { %v3232_v37 = vunpack.i.h.bf16 %v3230_v36  ;;  %v3231_v38 = vunpack.i.l.bf16 %v3230_v36 }
0x1181   :  { %v3112_v39 = vpack.c.bf16 %v3232_v37, %v3231_v38 }
0x1183   :  { %3113 = vmatprep.subr.bf16.mxu0 %v3112_v39 }
0x1184   :  { %3115 = vmatpush3.bf16.msra.mxu0 %v3112_v39 }
0x1185   :  { %3117 = vmatprep.subr.bf16.mxu0 %v3116_v50 }
0x1187   :  { %2964 = vmatmul.mubr.msk.f32.vlgmr.msra.gmra.mrb[10].mxu0 %vm135_vm0, %v1193_v41 }
0x1188   :  { %3119 = vmatpush3.bf16.msra.mxu0 %v3116_v50 }
0x125a   :  { %v2965_v42 = vpop.f32.mrb[10].mxu0 }
0x125b   :  { %v1284_v52 = vmul.f32 %v2965_v42, %v2965_v42  ;;  %v1274_v43 = vpop.f32.mrb[11].mxu0 }
0x125c   :  { %v1283_v44 = vmul.f32 %v1274_v43, %v1274_v43 }
0x125d   :  { %v1288_v51 = vsel %vm135_vm0, %v1284_v52, 0.0 }
0x125e   :  { %1289 = vadd.xlane.f32.xlu0 %v1288_v51  ;;  %v1285_v45 = vsel %vm135_vm0, %v1283_v44, 0.0 }
0x125f   :  { %1286 = vadd.xlane.f32.xlu1 %v1285_v45 }
0x12eb   :  { %v1290_v56 = vpop.xlane.xlu0 %1289 }
0x12ec   :  { %v1293_v57 = vmul.f32 0.0625, %v1290_v56  ;;  %v1287_v58 = vpop.xlane.xlu1 %1286 }
0x12ed   :  { %v1292_v59 = vmul.f32 0.0625, %v1287_v58 }
0x12ee   :  { %v1295_v61 = vadd.f32 1e-05, %v1293_v57 }
0x12ef   :  { %v1294_v63 = vadd.f32 1e-05, %v1292_v59 }
0x12f0   :  { %3289 = vrsqrt.f32 %v1295_v61 }
0x12f1   :  { %3291 = vrsqrt.f32 %v1294_v63 }
0x12fa   :  { %v3290_v2 = vpop.eup %3289 }
0x12fb   :  { %v3292_v3 = vpop.eup %3291  ;;  %v1299_v0 = vmul.f32 %v3290_v2, %v2965_v42 }
0x12fc   :  { %v1298_v5 = vmul.f32 %v3292_v3, %v1274_v43 }
0x12fd   :  { %v1307_v7 = vmul.f32 %v2740_v4, %v1299_v0 }
0x12fe   :  { %v1306_v6 = vmul.f32 %v2740_v4, %v1298_v5 }
0x1300   :  { %2970 = vmatprep.mubr.msk.f32.mxu0 %vm135_vm0, %v1306_v6 }
0x1301   :  { %2971 = vmatmul.mubr.msk.f32.vlgmr.msra.gmra.mrb[12].mxu0 %vm135_vm0, %v1307_v7 }
0x13d4   :  { %v2972_v8 = vpop.f32.mrb[12].mxu0 }
0x13d5   :  { %v1380_v9 = vpop.f32.mrb[13].mxu0 }
0x13d6   :  { %2977 = vmatprep.mubr.msk.f32.mxu1 %vm135_vm0, %v1380_v9 }
0x13d7   :  { %2978 = vmatmul.mubr.msk.f32.vlgmr.msra.gmra.mrb[12].mxu1 %vm135_vm0, %v2972_v8 }
0x14aa   :  { %v2979_v10 = vpop.f32.mrb[12].mxu1 }
0x14ab   :  { %v2746_v11 = vmul.f32 -1.442695, %v2979_v10  ;;  %v1466_v48 = vpop.f32.mrb[13].mxu1 }
0x14ac   :  { %v2745_v12 = vmul.f32 -1.442695, %v1466_v48 }
0x14ad   :  { %3293 = vpow2.f32 %v2746_v11 }
0x14ae   :  { %3295 = vpow2.f32 %v2745_v12 }
0x14b7   :  { %v3294_v13 = vpop.eup %3293 }
0x14b8   :  { %v3296_v14 = vpop.eup %3295  ;;  %v1482_v30 = vadd.f32 1.0, %v3294_v13 }
0x14b9   :  { %v1481_v15 = vadd.f32 1.0, %v3296_v14 }
0x14ba   :  { %3297 = vrcp.f32 %v1482_v30 }
0x14bb   :  { %3299 = vrcp.f32 %v1481_v15 }
0x14c4   :  { %v3298_v16 = vpop.eup %3297 }
0x14c5   :  { %v3300_v17 = vpop.eup %3299  ;;  %v3803_v18 = vmul.f32 %v3298_v16, %v2979_v10 }
0x14c6   :  { %v3805_v19 = vmul.f32 %v3300_v17, %v1466_v48 }
0x14c7   :  { %v3809_v31 = vmul.f32 %v3803_v18, %v3803_v18 }
0x14c8   :  { %v3813_v20 = vmul.f32 %v3805_v19, %v3805_v19 }
0x14c9   :  { %1507 = vrot.lane.b32.xlu1 %v3809_v31, %s3466_s0  ;;  %v1494_v47 = vsel %vm135_vm0, %v3809_v31, 0.0 }
0x14ca   :  { %1505 = vrot.lane.b32.xlu0 %v3813_v20, %s3466_s0 }
0x153b   :  { %v1508_v21 = vpop.permute.xlu1 %1507 }
0x153c   :  { %v1506_v22 = vpop.permute.xlu0 %1505  ;;  %v1514_v23 = vsel %vm135_vm0, %v1508_v21, 0.0 }
0x153d   :  { %1515 = vadd.xlane.f32.xlu0 %v1514_v23  ;;  %v1511_v28 = vsel %vm135_vm0, %v1506_v22, 0.0 }
0x153e   :  { %1512 = vadd.xlane.f32.xlu1 %v1511_v28 }
0x15ca   :  { %v1516_v24 = vpop.xlane.xlu0 %1515 }
0x15cb   :  { %v1518_v26 = vadd.f32 1e-06, %v1516_v24  ;;  %v1513_v27 = vpop.xlane.xlu1 %1512 }
0x15cc   :  { %v1517_v1 = vadd.f32 1e-06, %v1513_v27 }
0x15cd   :  { %3301 = vrsqrt.f32 %v1518_v26 }
0x15ce   :  { %3303 = vrsqrt.f32 %v1517_v1 }
0x15d7   :  { %v3302_v32 = vpop.eup %3301 }
0x15d8   :  { %v3304_v29 = vpop.eup %3303  ;;  %v1522_v33 = vmul.f32 %v3302_v32, %v3803_v18 }
0x15d9   :  { %v1521_v34 = vmul.f32 %v3304_v29, %v3805_v19 }
0x15da   :  { %1529 = vrot.lane.b32.xlu1 %v1522_v33, %s3466_s0 }
0x15db   :  { %1527 = vrot.lane.b32.xlu0 %v1521_v34, %s3466_s0 }
0x15de   :  { %1612 = vperm.xlu1 %3192, %v3300_v17  }
0x15df   :  { %1617 = vperm.xlu0 %3191, %v3298_v16  }
0x164c   :  { %v1530_v35 = vpop.permute.xlu1 %1529 }
0x164d   :  { %v1528_v36 = vpop.permute.xlu0 %1527 }
0x164e   :  { %v3825_v37 = vpack.c.bf16 %v1530_v35, %v1528_v36  ;;  %2984 = vmatprep.mubr.msk.f32.mxu0 %vm135_vm0, %v1528_v36 }
0x1650   :  { %3126 = vmatprep.subr.msk.bf16.mxu0 %vm3671_vm3, %v3825_v37 }
0x1651   :  { %3129 = vmatpush3.bf16.xpose.msk.msra.mxu0 %vm3671_vm3, %v3825_v37 }
0x1658   :  { %2985 = vmatmul.mubr.msk.f32.vlgmr.msra.gmra.mrb[14].mxu0 %vm135_vm0, %v1530_v35 }
0x165d   :  { %v1613_v38 = vpop.permute.xlu1 %1612 }
0x165e   :  { %v3836_v39 = vmul.f32 %v1613_v38, %v3805_v19  ;;  %v1618_v41 = vpop.permute.xlu0 %1617 }
0x165f   :  { %v3839_v42 = vmul.f32 %v1618_v41, %v3803_v18 }
0x1661   :  { %v3233_v52 = vpack.i.bf16 %v3839_v42, %v3836_v39 }
0x1663   :  { %3234 = vrot.lane.b32.xlu1 %v3233_v52, %s3468_s4 }
0x16d5   :  { %v3235_v43 = vpop.permute.xlu1 %3234 }
0x16d6   :  { %v3237_v44 = vunpack.i.h.bf16 %v3235_v43  ;;  %v3236_v51 = vunpack.i.l.bf16 %v3235_v43 }
0x16d8   :  { %v3130_v45 = vpack.c.bf16 %v3237_v44, %v3236_v51 }
0x16da   :  { %3131 = vmatprep.subr.bf16.mxu1 %v3130_v45 }
0x16db   :  { %3133 = vmatpush3.bf16.msra.mxu1 %v3130_v45 }
0x172b   :  { %v2986_v46 = vpop.f32.mrb[14].mxu0 }
0x172c   :  { %v1621_v49 = vmul.f32 %v2986_v46, %v1618_v41  ;;  %v1601_v50 = vpop.f32.mrb[15].mxu0 }
0x172d   :  { %v1620_v53 = vmul.f32 %v1613_v38, %v1601_v50 }
0x172e   :  { %v3848_v55 = vmul.f32 %v1621_v49, %v3701_v62 }
0x172f   :  { %v3845_v54 = vmul.f32 %v1620_v53, %v3696_v60 }
0x1731   :  { %2991 = vmatprep.mubr.msk.f32.mxu1 %vm135_vm0, %v3845_v54  ;;  %3005 = vmatprep.mubr.msk.f32.mxu0 %vm135_vm0, %v3845_v54 }
0x1732   :  { %2992 = vmatmul.mubr.msk.f32.vlgmr.msra.gmra.mrb[14].mxu1 %vm135_vm0, %v3848_v55 }
0x1733   :  { %2998 = vmatprep.mubr.msk.f32.mxu1 %vm135_vm0, %v3845_v54 }
0x1805   :  { %v2993_v56 = vpop.f32.mrb[14].mxu1 }
0x1806   :  { %1719 = vrot.lane.b32.xlu1 %v2993_v56, %s3469_s1  ;;  %v1706_v60 = vpop.f32.mrb[15].mxu1 }
0x1807   :  { %1717 = vrot.lane.b32.xlu0 %v1706_v60, %s3469_s1 }
0x1878   :  { %v1720_v62 = vpop.permute.xlu1 %1719 }
0x1879   :  { %v1724_v57 = vsub.f32 %v3839_v42, %v1720_v62  ;;  %v1718_v58 = vpop.permute.xlu0 %1717 }
0x187a   :  { %v1723_v59 = vsub.f32 %v3836_v39, %v1718_v58  ;;  %v1491_v58 = vsel %vm135_vm0, %v3813_v20, 0.0 }
0x187c   :  { %v3238_v61 = vpack.i.bf16 %v1724_v57, %v1723_v59 }
0x187e   :  { %3239 = vrot.lane.b32.xlu0 %v3238_v61, %s3468_s4 }
0x18f0   :  { %v3240_v63 = vpop.permute.xlu0 %3239 }
0x18f1   :  { %v3242_v2 = vunpack.i.h.bf16 %v3240_v63  ;;  %v3241_v3 = vunpack.i.l.bf16 %v3240_v63 }
0x18f3   :  { %v3134_v4 = vpack.c.bf16 %v3242_v2, %v3241_v3 }
0x18f5   :  { %3135 = vmatprep.subr.bf16.mxu1 %v3134_v4 }
0x18f6   :  { %3137 = vmatpush3.bf16.msra.mxu1 %v3134_v4 }
0x18f9   :  { %2999 = vmatmul.mubr.msk.f32.vlgmr.msra.gmra.mrb[16].mxu1 %vm135_vm0, %v3848_v55 }
0x18fa   :  { %3012 = vmatprep.mubr.msk.f32.mxu1 %vm135_vm0, %v3845_v54 }
0x19cc   :  { %v3000_v0 = vpop.f32.mrb[16].mxu1 }
0x19cd   :  { %1812 = vrot.lane.b32.xlu0 %v3000_v0, %s3469_s1  ;;  %v1799_v5 = vpop.f32.mrb[17].mxu1 }
0x19ce   :  { %1810 = vrot.lane.b32.xlu1 %v1799_v5, %s3469_s1 }
0x1a3f   :  { %v1813_v6 = vpop.permute.xlu0 %1812 }
0x1a40   :  { %v1817_v7 = vsub.f32 %v3839_v42, %v1813_v6  ;;  %v1811_v8 = vpop.permute.xlu1 %1810 }
0x1a41   :  { %v1816_v9 = vsub.f32 %v3836_v39, %v1811_v8 }
0x1a43   :  { %v3243_v10 = vpack.i.bf16 %v1817_v7, %v1816_v9 }
0x1a45   :  { %3244 = vrot.lane.b32.xlu1 %v3243_v10, %s3468_s4 }
0x1ab7   :  { %v3245_v11 = vpop.permute.xlu1 %3244 }
0x1ab8   :  { %v3247_v48 = vunpack.i.h.bf16 %v3245_v11  ;;  %v3246_v12 = vunpack.i.l.bf16 %v3245_v11 }
0x1aba   :  { %v3138_v13 = vpack.c.bf16 %v3247_v48, %v3246_v12 }
0x1abc   :  { %3139 = vmatprep.subr.bf16.mxu0 %v3138_v13 }
0x1abd   :  { %3141 = vmatpush3.bf16.msra.mxu0 %v3138_v13 }
0x1ac0   :  { %3006 = vmatmul.mubr.msk.f32.vlgmr.msra.gmra.mrb[16].mxu0 %vm135_vm0, %v3848_v55 }
0x1ac1   :  { %3019 = vmatprep.mubr.msk.f32.mxu0 %vm135_vm0, %v3845_v54 }
0x1b93   :  { %v3007_v14 = vpop.f32.mrb[16].mxu0 }
0x1b94   :  { %1905 = vrot.lane.b32.xlu1 %v3007_v14, %s3469_s1  ;;  %v1892_v30 = vpop.f32.mrb[17].mxu0 }
0x1b95   :  { %1903 = vrot.lane.b32.xlu0 %v1892_v30, %s3469_s1 }
0x1c06   :  { %v1906_v15 = vpop.permute.xlu1 %1905 }
0x1c07   :  { %v1910_v16 = vsub.f32 %v3839_v42, %v1906_v15  ;;  %v1904_v17 = vpop.permute.xlu0 %1903 }
0x1c08   :  { %v1909_v21 = vsub.f32 %v3836_v39, %v1904_v17 }
0x1c0a   :  { %v3248_v22 = vpack.i.bf16 %v1910_v16, %v1909_v21 }
0x1c0c   :  { %3249 = vrot.lane.b32.xlu0 %v3248_v22, %s3468_s4 }
0x1c7e   :  { %v3250_v23 = vpop.permute.xlu0 %3249 }
0x1c7f   :  { %v3252_v28 = vunpack.i.h.bf16 %v3250_v23  ;;  %v3251_v24 = vunpack.i.l.bf16 %v3250_v23 }
0x1c81   :  { %v3142_v26 = vpack.c.bf16 %v3252_v28, %v3251_v24 }
0x1c83   :  { %3143 = vmatprep.subr.bf16.mxu1 %v3142_v26 }
0x1c84   :  { %3145 = vmatpush3.bf16.msra.mxu1 %v3142_v26 }
0x1c87   :  { %3013 = vmatmul.mubr.msk.f32.vlgmr.msra.gmra.mrb[18].mxu1 %vm135_vm0, %v3848_v55 }
0x1c88   :  { %3026 = vmatprep.mubr.msk.f32.mxu1 %vm135_vm0, %v3845_v54 }
0x1d5a   :  { %v3014_v27 = vpop.f32.mrb[18].mxu1 }
0x1d5b   :  { %1998 = vrot.lane.b32.xlu0 %v3014_v27, %s3469_s1  ;;  %v1985_v1 = vpop.f32.mrb[19].mxu1 }
0x1d5c   :  { %1996 = vrot.lane.b32.xlu1 %v1985_v1, %s3469_s1 }
0x1dcd   :  { %v1999_v32 = vpop.permute.xlu0 %1998 }
0x1dce   :  { %v2003_v29 = vsub.f32 %v3839_v42, %v1999_v32  ;;  %v1997_v33 = vpop.permute.xlu1 %1996 }
0x1dcf   :  { %v2002_v34 = vsub.f32 %v3836_v39, %v1997_v33 }
0x1dd1   :  { %v3253_v35 = vpack.i.bf16 %v2003_v29, %v2002_v34  ;;  %v1392_v29 = vld [vmem:[%s3982_s9] sm:$0xff] }
0x1dd3   :  { %3254 = vrot.lane.b32.xlu1 %v3253_v35, %s3468_s4 }
0x1e45   :  { %v3255_v36 = vpop.permute.xlu1 %3254 }
0x1e46   :  { %v3257_v38 = vunpack.i.h.bf16 %v3255_v36  ;;  %v3256_v41 = vunpack.i.l.bf16 %v3255_v36 }
0x1e48   :  { %v3146_v52 = vpack.c.bf16 %v3257_v38, %v3256_v41 }
0x1e4a   :  { %3147 = vmatprep.subr.bf16.mxu0 %v3146_v52 }
0x1e4b   :  { %3149 = vmatpush3.bf16.msra.mxu0 %v3146_v52 }
0x1e4e   :  { %3020 = vmatmul.mubr.msk.f32.vlgmr.msra.gmra.mrb[18].mxu0 %vm135_vm0, %v3848_v55 }
0x1e4f   :  { %3033 = vmatprep.mubr.msk.f32.mxu0 %vm135_vm0, %v3845_v54 }
0x1f21   :  { %v3021_v43 = vpop.f32.mrb[18].mxu0 }
0x1f22   :  { %2091 = vrot.lane.b32.xlu1 %v3021_v43, %s3469_s1  ;;  %v2078_v44 = vpop.f32.mrb[19].mxu0 }
0x1f23   :  { %2089 = vrot.lane.b32.xlu0 %v2078_v44, %s3469_s1 }
0x1f94   :  { %v2092_v51 = vpop.permute.xlu1 %2091 }
0x1f95   :  { %v2096_v45 = vsub.f32 %v3839_v42, %v2092_v51  ;;  %v2090_v46 = vpop.permute.xlu0 %2089  ;;  %v2771_v51 = vld [vmem:[%s3981_s8] ss:$0 sm:$0xff] }
0x1f96   :  { %v2095_v49 = vsub.f32 %v3836_v39, %v2090_v46 }
0x1f98   :  { %v3258_v50 = vpack.i.bf16 %v2096_v45, %v2095_v49 }
0x1f9a   :  { %3259 = vrot.lane.b32.xlu0 %v3258_v50, %s3468_s4 }
0x200c   :  { %v3260_v53 = vpop.permute.xlu0 %3259 }
0x200d   :  { %v3262_v56 = vunpack.i.h.bf16 %v3260_v53  ;;  %v3261_v60 = vunpack.i.l.bf16 %v3260_v53 }
0x200f   :  { %v3150_v62 = vpack.c.bf16 %v3262_v56, %v3261_v60 }
0x2011   :  { %3151 = vmatprep.subr.bf16.mxu1 %v3150_v62 }
0x2012   :  { %3153 = vmatpush3.bf16.msra.mxu1 %v3150_v62 }
0x2013   :  { %3160 = vmatprep.subr.msk.bf16.mxu1 %vm3671_vm3, %v3825_v37 }
0x2015   :  { %3027 = vmatmul.mubr.msk.f32.vlgmr.msra.gmra.mrb[20].mxu1 %vm135_vm0, %v3848_v55 }
0x201b   :  { %3163 = vmatpush3.bf16.xpose.msk.msra.mxu1 %vm3671_vm3, %v3825_v37 }
0x20e8   :  { %v3028_v54 = vpop.f32.mrb[20].mxu1 }
0x20e9   :  { %2184 = vrot.lane.b32.xlu0 %v3028_v54, %s3469_s1  ;;  %v2171_v57 = vpop.f32.mrb[21].mxu1 }
0x20ea   :  { %2182 = vrot.lane.b32.xlu1 %v2171_v57, %s3469_s1 }
0x2108   :  { %1492 = vadd.xlane.f32.xlu0 %v1491_v58 }
0x215b   :  { %v2185_v59 = vpop.permute.xlu0 %2184 }
0x215c   :  { %v2189_v61 = vsub.f32 %v3839_v42, %v2185_v59  ;;  %v2183_v63 = vpop.permute.xlu1 %2182 }
0x215d   :  { %v2188_v2 = vsub.f32 %v3836_v39, %v2183_v63 }
0x215f   :  { %v3263_v3 = vpack.i.bf16 %v2189_v61, %v2188_v2 }
0x2161   :  { %3264 = vrot.lane.b32.xlu1 %v3263_v3, %s3468_s4 }
0x2185   :  { %1495 = vadd.xlane.f32.xlu1 %v1494_v47 }
0x2195   :  { %v1493_v37 = vpop.xlane.xlu0 %1492 }
0x2196   :  { %v1497_v4 = vadd.f32 1e-06, %v1493_v37 }
0x2198   :  { %3305 = vrsqrt.f32 %v1497_v4  ;;  %v2604_v4 = vld [vmem:[#allocation10] sm:$0xff] }
0x21a2   :  { %v3306_v0 = vpop.eup %3305 }
0x21a3   :  { %v1501_v20 = vmul.f32 %v3306_v0, %v3805_v19  ;;  %v2605_v0 = vld [vmem:[#allocation10 + $0x8] sm:$0xff] }
0x21a5   :  { %v1523_v5 = vmul.f32 0.25, %v1501_v20  ;;  %v3172_v20 = vpack.c.bf16 %v2605_v0, %v2604_v4 }
0x21a7   :  { %3040 = vmatprep.mubr.msk.f32.mxu1 %vm135_vm0, %v1523_v5  ;;  %3173 = vmatprep.subr.bf16.mxu1 %v3172_v20 }
0x21d3   :  { %v3265_v6 = vpop.permute.xlu1 %3264 }
0x21d4   :  { %v3267_v7 = vunpack.i.h.bf16 %v3265_v6  ;;  %v3266_v8 = vunpack.i.l.bf16 %v3265_v6 }
0x21d6   :  { %v3154_v9 = vpack.c.bf16 %v3267_v7, %v3266_v8 }
0x21d8   :  { %3155 = vmatprep.subr.bf16.mxu0 %v3154_v9 }
0x21d9   :  { %3157 = vmatpush3.bf16.msra.mxu0 %v3154_v9 }
0x21dc   :  { %3034 = vmatmul.mubr.msk.f32.vlgmr.msra.gmra.mrb[20].mxu0 %vm135_vm0, %v3848_v55 }
0x2212   :  { %v1496_v31 = vpop.xlane.xlu1 %1495 }
0x2213   :  { %v1498_v10 = vadd.f32 1e-06, %v1496_v31 }
0x2215   :  { %3307 = vrsqrt.f32 %v1498_v10 }
0x221f   :  { %v3308_v11 = vpop.eup %3307 }
0x2220   :  { %v1502_v48 = vmul.f32 %v3308_v11, %v3803_v18  ;;  %v2774_v11 = vld [vmem:[%s3983_s10] ss:$0 sm:$0xff]  ;;  %s3427_s10 = scalar_lea.vmem %s2695_s23, 256 }
0x2221   :  { %p3428_p12 = scmp.ne.s32.totalorder %s2695_s23, %s3427_s10  ;;  %p3433_p0 = scmp.lt.s32.totalorder %s3427_s10, %s3427_s10 }
0x2222   :  { %v1524_v12 = vmul.f32 0.25, %v1502_v48 }
0x2223   :  { %p3434_p1 = por %p3433_p0, %p3432_p13 }
0x2224   :  { %3041 = vmatmul.mubr.msk.f32.vlgmr.msra.gmra.mrb[22].mxu1 %vm135_vm0, %v1524_v12 }
0x2225   :  { %3175 = vmatpush3.bf16.msra.mxu1 %v3172_v20  ;;  %p3435_p2 = pnand %p3434_p1, %p3428_p12 }
0x22af   :  { %v3035_v19 = vpop.f32.mrb[20].mxu0 }
0x22b0   :  { %2277 = vrot.lane.b32.xlu1 %v3035_v19, %s3469_s1  ;;  %v2264_v13 = vpop.f32.mrb[21].mxu0 }
0x22b1   :  { %2275 = vrot.lane.b32.xlu0 %v2264_v13, %s3469_s1 }
0x22f7   :  { %v3042_v14 = vpop.f32.mrb[22].mxu1 }
0x22f8   :  { %v2355_v30 = vpop.f32.mrb[23].mxu1  ;;  %v2365_v26 = vmul.f32 %v3042_v14, %v3790_v40  ;;  %v1393_v40 = vld [vmem:[%s3982_s9 + $0x8] sm:$0xff]  ;;  %v2775_v14 = vld [vmem:[%s3984_s11] ss:$0 sm:$0xff] }
0x22f9   :  { %v2364_v15 = vmul.f32 %v2355_v30, %v3783_v25  ;;  %v3168_v33 = vpack.c.bf16 %v1393_v40, %v1392_v29 }
0x22fb   :  { %3047 = vmatprep.mubr.msk.f32.mxu0 %vm135_vm0, %v2364_v15 }
0x2322   :  { %v2278_v55 = vpop.permute.xlu1 %2277 }
0x2323   :  { %v2282_v16 = vsub.f32 %v3839_v42, %v2278_v55  ;;  %v2276_v17 = vpop.permute.xlu0 %2275 }
0x2324   :  { %v2281_v18 = vsub.f32 %v3836_v39, %v2276_v17 }
0x2326   :  { %v3268_v21 = vpack.i.bf16 %v2282_v16, %v2281_v18 }
0x2328   :  { %3269 = vrot.lane.b32.xlu0 %v3268_v21, %s3468_s4 }
0x239a   :  { %v3270_v22 = vpop.permute.xlu0 %3269 }
0x239b   :  { %v3272_v23 = vunpack.i.h.bf16 %v3270_v22  ;;  %v3271_v28 = vunpack.i.l.bf16 %v3270_v22 }
0x239d   :  { %v3164_v24 = vpack.c.bf16 %v3272_v23, %v3271_v28 }
0x239f   :  { %3165 = vmatprep.subr.bf16.mxu0 %v3164_v24 }
0x23a0   :  { %3167 = vmatpush3.bf16.msra.mxu0 %v3164_v24 }
0x23a1   :  { %3169 = vmatprep.subr.bf16.mxu0 %v3168_v33 }
0x23a3   :  { %3048 = vmatmul.mubr.msk.f32.vlgmr.msra.gmra.mrb[22].mxu0 %vm135_vm0, %v2365_v26 }
0x23a4   :  { %3171 = vmatpush3.bf16.msra.mxu0 %v3168_v33 }
0x2476   :  { %v3049_v25 = vpop.f32.mrb[22].mxu0 }
0x2477   :  { %v2456_v27 = vmul.f32 %v3049_v25, %v3049_v25  ;;  %v2446_v1 = vpop.f32.mrb[23].mxu0 }
0x2478   :  { %v2455_v42 = vmul.f32 %v2446_v1, %v2446_v1 }
0x2479   :  { %v2460_v32 = vsel %vm135_vm0, %v2456_v27, 0.0 }
0x247a   :  { %2461 = vadd.xlane.f32.xlu0 %v2460_v32  ;;  %v2457_v39 = vsel %vm135_vm0, %v2455_v42, 0.0 }
0x247b   :  { %2458 = vadd.xlane.f32.xlu1 %v2457_v39 }
0x2507   :  { %v2462_v34 = vpop.xlane.xlu0 %2461 }
0x2508   :  { %v2464_v35 = vmul.f32 0.0625, %v2462_v34  ;;  %v2459_v36 = vpop.xlane.xlu1 %2458 }
0x2509   :  { %v2463_v38 = vmul.f32 0.0625, %v2459_v36 }
0x250a   :  { %v2466_v41 = vadd.f32 1e-05, %v2464_v35 }
0x250b   :  { %v2465_v52 = vadd.f32 1e-05, %v2463_v38 }
0x250c   :  { %3309 = vrsqrt.f32 %v2466_v41 }
0x250d   :  { %3311 = vrsqrt.f32 %v2465_v52 }
0x2516   :  { %v3310_v43 = vpop.eup %3309 }
0x2517   :  { %v3312_v44 = vpop.eup %3311  ;;  %v2470_v45 = vmul.f32 %v3310_v43, %v3049_v25 }
0x2518   :  { %v2469_v46 = vmul.f32 %v3312_v44, %v2446_v1 }
0x2519   :  { %v2478_v50 = vmul.f32 %v2771_v51, %v2470_v45 }
0x251a   :  { %v2477_v49 = vmul.f32 %v2771_v51, %v2469_v46 }
0x251c   :  { %3054 = vmatprep.mubr.msk.f32.mxu0 %vm135_vm0, %v2477_v49 }
0x251d   :  { %3055 = vmatmul.mubr.msk.f32.vlgmr.msra.gmra.mrb[24].mxu0 %vm135_vm0, %v2478_v50 }
0x25f0   :  { %v3056_v53 = vpop.f32.mrb[24].mxu0 }
0x25f1   :  { %v2551_v56 = vpop.f32.mrb[25].mxu0  ;;  %v2563_v60 = vsel %vm135_vm0, %v3056_v53, 0.0 }
0x25f2   :  { %2564 = vadd.xlane.f32.xlu1 %v2563_v60  ;;  %v2560_v62 = vsel %vm135_vm0, %v2551_v56, 0.0 }
0x25f3   :  { %2561 = vadd.xlane.f32.xlu0 %v2560_v62 }
0x267f   :  { %v2565_v54 = vpop.xlane.xlu1 %2564 }
0x2680   :  { %v2567_v57 = vmul.f32 0.0625, %v2565_v54  ;;  %v2562_v58 = vpop.xlane.xlu0 %2561 }
0x2681   :  { %v2566_v59 = vmul.f32 0.0625, %v2562_v58 }
0x2682   :  { %v2569_v61 = vsub.f32 %v3056_v53, %v2567_v57 }
0x2683   :  { %v2568_v63 = vsub.f32 %v2551_v56, %v2566_v59 }
0x2684   :  { %v2571_v2 = vmul.f32 %v2569_v61, %v2569_v61 }
0x2685   :  { %v2570_v3 = vmul.f32 %v2568_v63, %v2568_v63 }
0x2686   :  { %v2575_v47 = vsel %vm135_vm0, %v2571_v2, 0.0 }
0x2687   :  { %2576 = vadd.xlane.f32.xlu1 %v2575_v47  ;;  %v2572_v37 = vsel %vm135_vm0, %v2570_v3, 0.0 }
0x2688   :  { %2573 = vadd.xlane.f32.xlu0 %v2572_v37 }
0x2714   :  { %v2577_v5 = vpop.xlane.xlu1 %2576 }
0x2715   :  { %v2579_v6 = vmul.f32 0.0625, %v2577_v5  ;;  %v2574_v7 = vpop.xlane.xlu0 %2573 }
0x2716   :  { %v2578_v8 = vmul.f32 0.0625, %v2574_v7 }
0x2717   :  { %v2581_v9 = vadd.f32 1e-05, %v2579_v6 }
0x2718   :  { %v2580_v31 = vadd.f32 1e-05, %v2578_v8 }
0x2719   :  { %3313 = vrsqrt.f32 %v2581_v9 }
0x271a   :  { %3315 = vrsqrt.f32 %v2580_v31 }
0x2723   :  { %v3314_v10 = vpop.eup %3313 }
0x2724   :  { %v3316_v48 = vpop.eup %3315  ;;  %v2585_v12 = vmul.f32 %v3314_v10, %v2569_v61 }
0x2725   :  { %v2584_v19 = vmul.f32 %v3316_v48, %v2568_v63 }
0x2726   :  { %v2594_v13 = vmul.f32 %v2774_v11, %v2585_v12 }
0x2727   :  { %v2593_v30 = vmul.f32 %v2774_v11, %v2584_v19 }
0x2728   :  { %v2603_v55 = vadd.f32 %v2775_v14, %v2594_v13 }
0x2729   :  { %v2602_v15 = vadd.f32 %v2775_v14, %v2593_v30 }
0x272b   :  { %3061 = vmatprep.mubr.msk.f32.mxu1 %vm135_vm0, %v2602_v15 }
0x272c   :  { %3062 = vmatmul.mubr.msk.f32.vlgmr.msra.gmra.mrb[24].mxu1 %vm135_vm0, %v2603_v55 }
0x27ff   :  { %v3063_v16 = vpop.f32.mrb[24].mxu1 }
0x2800   :  { %2688 = vst.msk [vmem:[#allocation11 + $0x8] sm:$0xff] %vm135_vm0, %v3063_v16  ;;  %v2678_v17 = vpop.f32.mrb[25].mxu1 }
0x2801   :  { %2687 = vst.msk [vmem:[#allocation11] sm:$0xff] %vm135_vm0, %v2678_v17 }
0x2802   :  { %3438 = shalt.err (!%p3435_p2)
}
0x2803   :  { %s3439_s12 = scalar_lea.hbm %s3986_s13, 256 }
0x2804   :  { %p3440_p3 = scmp.ne.s32.totalorder %s3986_s13, %s3439_s12  ;;  %p3443_p4 = scmp.lt.u32.totalorder %s3439_s12, %s3986_s13 }
0x2806   :  { %p3445_p5 = pnand %p3443_p4, %p3440_p3 }
0x2808   :  { %3448 = shalt.err (!%p3445_p5)
}
0x2809   :  { %2700 = dma.vmem_to_hbm [thread:$0]  %s2695_s23, 256, %s3986_s13, [#allocation4], %s3459_s20, %s3459_s20, %s3460_s21  }
0x280a   :  { %3455 = dma.done.wait [#allocation4], 256  }
0x280b   :  { %3456 = vsyncadd [#allocation4], 4294967040 }
0x280c   :  { %2704 = vsyncpa [#allocation3], 1 }
0x280d   :  { %2705 = vsyncpa [#allocation6], 1 }
0x280e   :  { %2706 = vsyncpa [#allocation9], 1 }
0x280f   :  { %2707 = vsyncpa [#allocation4], 1 }

</bundles_post_ra>
